<compile_context>
chip_gen: v5e
topology: v5e:2x2
jax: 0.10.0
libtpu: 0.0.40
codegen_flags: <defaults>
</compile_context>

<pallas_src>
import math
from functools import partial

import jax
import jax.numpy as jnp
from jax.experimental import pallas as pl
from jax.experimental.pallas import tpu as pltpu


def _im2col_gemm_kernel(x_ref, w_ref, o_ref, lhs_ref, *,
                        OX, OY, KX, KY, WZC, TOZC, OXY, M_pad, NB):
    """One (batch, oz-band) step of the valid 3D conv as a single deep-K MXU GEMM.

    x_ref:   [1, X, Y, Z*Cin]   bf16 input volume, (z, cin) folded onto the lane axis
    w_ref:   [KB, NPB]          bf16 band-Toeplitz GEMM weight, KB = KX*KY*WZ*Cin
    o_ref:   [1, M_pad, NPB]    f32 lane-dense output slab (M_pad = pad(OX*OY, 8))
    lhs_ref: [M_pad, KB]        bf16 VMEM im2col scratch
    """
    # z-window of this oz-band on the folded (z, cin) lane axis. Static full slice when
    # there is a single band (demo case); dynamic lane offset otherwise.
    if NB == 1:
        zsl = slice(None)
    else:
        zsl = pl.ds(pl.program_id(1) * TOZC, WZC)

    # Stage the KX*KY shifted slabs into the im2col scratch (static Python unroll).
    for dx in range(KX):
        for dy in range(KY):
            tap = dx * KY + dy
            slab = x_ref[0, dx:dx + OX, dy:dy + OY, zsl]            # [OX, OY, WZC]
            lhs_ref[0:OXY, tap * WZC:(tap + 1) * WZC] = slab.reshape(OXY, WZC)
    if M_pad > OXY:  # zero the padded rows so the full output block is valid
        lhs_ref[OXY:M_pad, :] = jnp.zeros((M_pad - OXY, lhs_ref.shape[1]),
                                          lhs_ref.dtype)

    # Single fused GEMM: bf16 operands, f32 accumulation on the MXU.
    o_ref[0] = jnp.dot(lhs_ref[...], w_ref[...],
                       preferred_element_type=jnp.float32).astype(o_ref.dtype)


def _pick_band(oz, cout, target=128):
    """Smallest divisor TOZ of OZ with TOZ*Cout >= target lanes (else the whole OZ)."""
    for toz in range(1, oz + 1):
        if oz % toz == 0 and toz * cout >= target:
            return toz
    return oz


def make_convolution_forward(frozen_kernel_xyzij, z_size):
    """Build the forward pass once for a frozen kernel (weight prep hoisted & cached).

    frozen_kernel_xyzij: [kx, ky, kz, c_out, c_in]   (FrozenKernel output layout 'xyzij')
    z_size:              the z extent of the input features (needed for the Toeplitz fold)
    Returns forward(features[B, X, Y, Z, Cin]) -> [B, X-kx+1, Y-ky+1, Z-kz+1, Cout].
    """
    KX, KY, KZ, Cout, Cin = frozen_kernel_xyzij.shape
    # k.mul_(1 / k[0, 0].numel() ** 0.5)  <=>  scale by 1/sqrt(kx*ky*kz)
    scale = 1.0 / math.sqrt(KX * KY * KZ)
    # 'xyzij' (out, in) -> DHWIO (in, out) for the channels-last conv.
    w = jnp.transpose(frozen_kernel_xyzij, (0, 1, 2, 4, 3)).astype(jnp.float32) * scale

    Z = int(z_size)
    OZ = Z - KZ + 1
    TOZ = _pick_band(OZ, Cout)          # oz values per band
    NB = OZ // TOZ                      # number of oz-bands (grid axis 1)
    WZ = TOZ + KZ - 1                   # z planes touched by one band
    WZC, TOZC = WZ * Cin, TOZ * Cin
    KB = KX * KY * WZC                  # GEMM contraction depth
    NOUTB = TOZ * Cout                  # useful output columns per band
    NPB = pl.cdiv(NOUTB, 128) * 128     # lane-dense output width per band

    # Band-invariant block-Toeplitz weight (built once, bf16):
    # w_gemm[(dx,dy,zz,cin), (t,cout)] = w[dx,dy,zz-t,cin,cout] if 0 <= zz-t < KZ else 0
    zz = jnp.arange(WZ)[:, None]
    tt = jnp.arange(TOZ)[None, :]
    dz = zz - tt                                                     # [WZ, TOZ]
    valid = (dz >= 0) & (dz < KZ)
    wb = w[:, :, jnp.clip(dz, 0, KZ - 1), :, :]                      # [KX,KY,WZ,TOZ,Cin,Cout]
    wb = jnp.where(valid[None, None, :, :, None, None], wb, 0.0)
    w_gemm = wb.transpose(0, 1, 2, 4, 3, 5).reshape(KB, NOUTB)
    w_gemm = jnp.pad(w_gemm, ((0, 0), (0, NPB - NOUTB))).astype(jnp.bfloat16)

    @jax.jit
    def forward(features):
        B, X, Y, Zf, Cin_f = features.shape
        assert Zf == Z and Cin_f == Cin
        OX, OY = X - KX + 1, Y - KY + 1
        OXY = OX * OY
        M_pad = pl.cdiv(OXY, 8) * 8     # sublane-aligned GEMM M / output rows

        # Fold (Z, Cin) onto the lane axis (contiguous reshape) and feed the MXU bf16.
        x_folded = features.astype(jnp.bfloat16).reshape(B, X, Y, Z * Cin)

        kernel = partial(_im2col_gemm_kernel, OX=OX, OY=OY, KX=KX, KY=KY,
                         WZC=WZC, TOZC=TOZC, OXY=OXY, M_pad=M_pad, NB=NB)

        flops = 2 * B * NB * M_pad * KB * NPB
        bytes_accessed = (x_folded.size * 2 + w_gemm.size * 2
                          + B * M_pad * NB * NPB * 4)

        out_p = pl.pallas_call(
            kernel,
            out_shape=jax.ShapeDtypeStruct((B, M_pad, NB * NPB), jnp.float32),
            grid=(B, NB),
            in_specs=[
                # Input block constant along the band axis -> not re-fetched per band.
                pl.BlockSpec((1, X, Y, Z * Cin), lambda b, j: (b, 0, 0, 0)),
                # Band-invariant weight: constant index_map -> fetched once.
                pl.BlockSpec((KB, NPB), lambda b, j: (0, 0)),
            ],
            out_specs=pl.BlockSpec((1, M_pad, NPB), lambda b, j: (b, 0, j)),
            scratch_shapes=[pltpu.VMEM((M_pad, KB), jnp.bfloat16)],
            compiler_params=pltpu.CompilerParams(
                dimension_semantics=("parallel", "parallel")),
            cost_estimate=pl.CostEstimate(flops=int(flops), transcendentals=0,
                                          bytes_accessed=int(bytes_accessed)),
        )(x_folded, w_gemm)

        # Strip the M/N padding and restore [B, OX, OY, OZ, Cout] (oz = band*TOZ + t).
        out = out_p.reshape(B, M_pad, NB, NPB)[:, :OXY, :, :NOUTB]
        return out.reshape(B, OX, OY, NB * TOZ, Cout)

    return forward


def convolution_forward(features, frozen_kernel_xyzij):
    """One-shot convenience wrapper (for repeated calls, reuse make_convolution_forward)."""
    return make_convolution_forward(frozen_kernel_xyzij, features.shape[3])(features)


if __name__ == "__main__":
    key = jax.random.PRNGKey(0)
    B, S, size = 2, 8, 3          # batch, spatial extent, kernel size (steps=(1,1,1))
    Cin, Cout = 4, 8              # dim(Rs_in), dim(Rs_out) of the synthetic kernel

    kf, kw = jax.random.split(key)
    features = jax.random.normal(kf, (B, S, S, S, Cin), dtype=jnp.float32)
    frozen_kernel = jax.random.normal(kw, (size, size, size, Cout, Cin), dtype=jnp.float32)

    conv_fwd = make_convolution_forward(frozen_kernel, z_size=S)   # weight prep hoisted
    out = jax.block_until_ready(conv_fwd(features))

    # Pure-JAX reference for the exact same semantics (high precision, f32).
    OXr = S - size + 1
    scale = 1.0 / math.sqrt(size ** 3)
    w_ref = jnp.transpose(frozen_kernel, (0, 1, 2, 4, 3)) * scale
    ref = jnp.zeros((B, OXr, OXr, OXr, Cout), jnp.float32)
    for dx in range(size):
        for dy in range(size):
            for dz in range(size):
                patch = features[:, dx:dx + OXr, dy:dy + OXr, dz:dz + OXr, :]
                ref = ref + jnp.einsum(
                    "bxyzc,cd->bxyzd", patch, w_ref[dx, dy, dz],
                    precision=jax.lax.Precision.HIGHEST,
                )

    assert out.shape == (B, OXr, OXr, OXr, Cout), out.shape
    max_err = float(jnp.max(jnp.abs(out - ref)))
    # bf16 MXU operands with f32 accumulation => bf16-level rounding; scale-aware tol.
    tol = 2e-2 * max(1.0, float(jnp.max(jnp.abs(ref))))
    assert max_err < tol, f"max abs err {max_err} vs tol {tol}"
    print("KERNEL_OK")
</pallas_src>

<mosaic_0001>
module attributes {stable_mosaic.version = 11 : i64} {
  func.func @_im2col_gemm_kernel(%arg0: i32, %arg1: i32, %arg2: memref<1x8x8x32xbf16, #tpu.memory_space<vmem>>, %arg3: memref<288x128xbf16, #tpu.memory_space<vmem>>, %arg4: memref<1x40x128xf32, #tpu.memory_space<vmem>>, %arg5: memref<40x288xbf16, #tpu.memory_space<vmem>>) attributes {dimension_semantics = [#tpu.dimension_semantics<parallel>, #tpu.dimension_semantics<parallel>], iteration_bounds = array<i64: 2, 1>, scalar_prefetch = 0 : i64, scratch_operands = 1 : i64, tpu.core_type = #tpu.core_type<tc>, window_params = [{transform_indices = @transform_0, window_bounds = array<i64: 1, 8, 8, 32>}, {pipeline_mode = #tpu.pipeline_mode<synchronous>, transform_indices = @transform_1, window_bounds = array<i64: 288, 128>}, {transform_indices = @transform_2, window_bounds = array<i64: 1, 40, 128>}]} {
    %c0 = arith.constant 0 : index
    %c0_0 = arith.constant 0 : index
    %c0_1 = arith.constant 0 : index
    %c0_2 = arith.constant 0 : index
    %0 = vector.load %arg2[%c0, %c0_0, %c0_1, %c0_2] : memref<1x8x8x32xbf16, #tpu.memory_space<vmem>>, vector<1x6x6x32xbf16>
    %1 = vector.shape_cast %0 : vector<1x6x6x32xbf16> to vector<6x6x32xbf16>
    %2 = vector.shape_cast %1 : vector<6x6x32xbf16> to vector<36x32xbf16>
    %c0_3 = arith.constant 0 : index
    %c0_4 = arith.constant 0 : index
    %3 = vector.load %arg5[%c0_3, %c0_4] : memref<40x288xbf16, #tpu.memory_space<vmem>>, vector<36x32xbf16>
    tpu.vector_store %arg5[%c0_3, %c0_4], %2 {strides = array<i32>} : memref<40x288xbf16, #tpu.memory_space<vmem>>, vector<36x32xbf16>,
    %c0_5 = arith.constant 0 : index
    %c0_6 = arith.constant 0 : index
    %c1 = arith.constant 1 : index
    %c0_7 = arith.constant 0 : index
    %4 = vector.load %arg2[%c0_5, %c0_6, %c1, %c0_7] : memref<1x8x8x32xbf16, #tpu.memory_space<vmem>>, vector<1x6x6x32xbf16>
    %5 = vector.shape_cast %4 : vector<1x6x6x32xbf16> to vector<6x6x32xbf16>
    %6 = vector.shape_cast %5 : vector<6x6x32xbf16> to vector<36x32xbf16>
    %c0_8 = arith.constant 0 : index
    %c32 = arith.constant 32 : index
    %7 = vector.load %arg5[%c0_8, %c32] : memref<40x288xbf16, #tpu.memory_space<vmem>>, vector<36x32xbf16>
    tpu.vector_store %arg5[%c0_8, %c32], %6 {strides = array<i32>} : memref<40x288xbf16, #tpu.memory_space<vmem>>, vector<36x32xbf16>,
    %c0_9 = arith.constant 0 : index
    %c0_10 = arith.constant 0 : index
    %c2 = arith.constant 2 : index
    %c0_11 = arith.constant 0 : index
    %8 = vector.load %arg2[%c0_9, %c0_10, %c2, %c0_11] : memref<1x8x8x32xbf16, #tpu.memory_space<vmem>>, vector<1x6x6x32xbf16>
    %9 = vector.shape_cast %8 : vector<1x6x6x32xbf16> to vector<6x6x32xbf16>
    %10 = vector.shape_cast %9 : vector<6x6x32xbf16> to vector<36x32xbf16>
    %c0_12 = arith.constant 0 : index
    %c64 = arith.constant 64 : index
    %11 = vector.load %arg5[%c0_12, %c64] : memref<40x288xbf16, #tpu.memory_space<vmem>>, vector<36x32xbf16>
    tpu.vector_store %arg5[%c0_12, %c64], %10 {strides = array<i32>} : memref<40x288xbf16, #tpu.memory_space<vmem>>, vector<36x32xbf16>,
    %c0_13 = arith.constant 0 : index
    %c1_14 = arith.constant 1 : index
    %c0_15 = arith.constant 0 : index
    %c0_16 = arith.constant 0 : index
    %12 = vector.load %arg2[%c0_13, %c1_14, %c0_15, %c0_16] : memref<1x8x8x32xbf16, #tpu.memory_space<vmem>>, vector<1x6x6x32xbf16>
    %13 = vector.shape_cast %12 : vector<1x6x6x32xbf16> to vector<6x6x32xbf16>
    %14 = vector.shape_cast %13 : vector<6x6x32xbf16> to vector<36x32xbf16>
    %c0_17 = arith.constant 0 : index
    %c96 = arith.constant 96 : index
    %15 = vector.load %arg5[%c0_17, %c96] : memref<40x288xbf16, #tpu.memory_space<vmem>>, vector<36x32xbf16>
    tpu.vector_store %arg5[%c0_17, %c96], %14 {strides = array<i32>} : memref<40x288xbf16, #tpu.memory_space<vmem>>, vector<36x32xbf16>,
    %c0_18 = arith.constant 0 : index
    %c1_19 = arith.constant 1 : index
    %c1_20 = arith.constant 1 : index
    %c0_21 = arith.constant 0 : index
    %16 = vector.load %arg2[%c0_18, %c1_19, %c1_20, %c0_21] : memref<1x8x8x32xbf16, #tpu.memory_space<vmem>>, vector<1x6x6x32xbf16>
    %17 = vector.shape_cast %16 : vector<1x6x6x32xbf16> to vector<6x6x32xbf16>
    %18 = vector.shape_cast %17 : vector<6x6x32xbf16> to vector<36x32xbf16>
    %c0_22 = arith.constant 0 : index
    %c128 = arith.constant 128 : index
    %19 = vector.load %arg5[%c0_22, %c128] : memref<40x288xbf16, #tpu.memory_space<vmem>>, vector<36x32xbf16>
    tpu.vector_store %arg5[%c0_22, %c128], %18 {strides = array<i32>} : memref<40x288xbf16, #tpu.memory_space<vmem>>, vector<36x32xbf16>,
    %c0_23 = arith.constant 0 : index
    %c1_24 = arith.constant 1 : index
    %c2_25 = arith.constant 2 : index
    %c0_26 = arith.constant 0 : index
    %20 = vector.load %arg2[%c0_23, %c1_24, %c2_25, %c0_26] : memref<1x8x8x32xbf16, #tpu.memory_space<vmem>>, vector<1x6x6x32xbf16>
    %21 = vector.shape_cast %20 : vector<1x6x6x32xbf16> to vector<6x6x32xbf16>
    %22 = vector.shape_cast %21 : vector<6x6x32xbf16> to vector<36x32xbf16>
    %c0_27 = arith.constant 0 : index
    %c160 = arith.constant 160 : index
    %23 = vector.load %arg5[%c0_27, %c160] : memref<40x288xbf16, #tpu.memory_space<vmem>>, vector<36x32xbf16>
    tpu.vector_store %arg5[%c0_27, %c160], %22 {strides = array<i32>} : memref<40x288xbf16, #tpu.memory_space<vmem>>, vector<36x32xbf16>,
    %c0_28 = arith.constant 0 : index
    %c2_29 = arith.constant 2 : index
    %c0_30 = arith.constant 0 : index
    %c0_31 = arith.constant 0 : index
    %24 = vector.load %arg2[%c0_28, %c2_29, %c0_30, %c0_31] : memref<1x8x8x32xbf16, #tpu.memory_space<vmem>>, vector<1x6x6x32xbf16>
    %25 = vector.shape_cast %24 : vector<1x6x6x32xbf16> to vector<6x6x32xbf16>
    %26 = vector.shape_cast %25 : vector<6x6x32xbf16> to vector<36x32xbf16>
    %c0_32 = arith.constant 0 : index
    %c192 = arith.constant 192 : index
    %27 = vector.load %arg5[%c0_32, %c192] : memref<40x288xbf16, #tpu.memory_space<vmem>>, vector<36x32xbf16>
    tpu.vector_store %arg5[%c0_32, %c192], %26 {strides = array<i32>} : memref<40x288xbf16, #tpu.memory_space<vmem>>, vector<36x32xbf16>,
    %c0_33 = arith.constant 0 : index
    %c2_34 = arith.constant 2 : index
    %c1_35 = arith.constant 1 : index
    %c0_36 = arith.constant 0 : index
    %28 = vector.load %arg2[%c0_33, %c2_34, %c1_35, %c0_36] : memref<1x8x8x32xbf16, #tpu.memory_space<vmem>>, vector<1x6x6x32xbf16>
    %29 = vector.shape_cast %28 : vector<1x6x6x32xbf16> to vector<6x6x32xbf16>
    %30 = vector.shape_cast %29 : vector<6x6x32xbf16> to vector<36x32xbf16>
    %c0_37 = arith.constant 0 : index
    %c224 = arith.constant 224 : index
    %31 = vector.load %arg5[%c0_37, %c224] : memref<40x288xbf16, #tpu.memory_space<vmem>>, vector<36x32xbf16>
    tpu.vector_store %arg5[%c0_37, %c224], %30 {strides = array<i32>} : memref<40x288xbf16, #tpu.memory_space<vmem>>, vector<36x32xbf16>,
    %c0_38 = arith.constant 0 : index
    %c2_39 = arith.constant 2 : index
    %c2_40 = arith.constant 2 : index
    %c0_41 = arith.constant 0 : index
    %32 = vector.load %arg2[%c0_38, %c2_39, %c2_40, %c0_41] : memref<1x8x8x32xbf16, #tpu.memory_space<vmem>>, vector<1x6x6x32xbf16>
    %33 = vector.shape_cast %32 : vector<1x6x6x32xbf16> to vector<6x6x32xbf16>
    %34 = vector.shape_cast %33 : vector<6x6x32xbf16> to vector<36x32xbf16>
    %c0_42 = arith.constant 0 : index
    %c256 = arith.constant 256 : index
    %35 = vector.load %arg5[%c0_42, %c256] : memref<40x288xbf16, #tpu.memory_space<vmem>>, vector<36x32xbf16>
    tpu.vector_store %arg5[%c0_42, %c256], %34 {strides = array<i32>} : memref<40x288xbf16, #tpu.memory_space<vmem>>, vector<36x32xbf16>,
    %cst = arith.constant 0.000000e+00 : bf16
    %36 = vector.broadcast %cst : bf16 to vector<4x288xbf16>
    %c36 = arith.constant 36 : index
    %c0_43 = arith.constant 0 : index
    %37 = vector.load %arg5[%c36, %c0_43] : memref<40x288xbf16, #tpu.memory_space<vmem>>, vector<4x288xbf16>
    tpu.vector_store %arg5[%c36, %c0_43], %36 {strides = array<i32>} : memref<40x288xbf16, #tpu.memory_space<vmem>>, vector<4x288xbf16>,
    %c0_44 = arith.constant 0 : index
    %c0_45 = arith.constant 0 : index
    %38 = vector.load %arg5[%c0_44, %c0_45] : memref<40x288xbf16, #tpu.memory_space<vmem>>, vector<40x288xbf16>
    %c0_46 = arith.constant 0 : index
    %c0_47 = arith.constant 0 : index
    %39 = vector.load %arg3[%c0_46, %c0_47] : memref<288x128xbf16, #tpu.memory_space<vmem>>, vector<288x128xbf16>
    %cst_48 = arith.constant dense<0.000000e+00> : vector<40x128xf32>
    %40 = tpu.matmul %38, %39, %cst_48 {dimension_numbers = #tpu.dot_dimension_numbers<[1], [0], [0], [1], [0, 0, 1, 1], [], []>} : vector<40x288xbf16>, vector<288x128xbf16>, vector<40x128xf32> -> vector<40x128xf32>
    %c0_49 = arith.constant 0 : index
    %c0_50 = arith.constant 0 : index
    %c0_51 = arith.constant 0 : index
    %41 = vector.load %arg4[%c0_49, %c0_50, %c0_51] : memref<1x40x128xf32, #tpu.memory_space<vmem>>, vector<1x40x128xf32>
    %42 = vector.shape_cast %41 : vector<1x40x128xf32> to vector<40x128xf32>
    %43 = vector.shape_cast %40 : vector<40x128xf32> to vector<1x40x128xf32>
    tpu.vector_store %arg4[%c0_49, %c0_50, %c0_51], %43 {strides = array<i32>} : memref<1x40x128xf32, #tpu.memory_space<vmem>>, vector<1x40x128xf32>,
    return
  }
  func.func @transform_0(%arg0: i32, %arg1: i32) -> (i32, i32, i32, i32) {
    %c0_i32 = arith.constant 0 : i32
    %c0_i32_0 = arith.constant 0 : i32
    %c0_i32_1 = arith.constant 0 : i32
    %c0_i32_2 = arith.constant 0 : i32
    return %arg0, %c0_i32, %c0_i32_0, %c0_i32_1 : i32, i32, i32, i32
  }
  func.func @transform_1(%arg0: i32, %arg1: i32) -> (i32, i32) {
    %c0_i32 = arith.constant 0 : i32
    %c0_i32_0 = arith.constant 0 : i32
    %c0_i32_1 = arith.constant 0 : i32
    return %c0_i32, %c0_i32_0 : i32, i32
  }
  func.func @transform_2(%arg0: i32, %arg1: i32) -> (i32, i32, i32) {
    %c0_i32 = arith.constant 0 : i32
    %c0_i32_0 = arith.constant 0 : i32
    return %arg0, %c0_i32, %arg1 : i32, i32, i32
  }
}

</mosaic_0001>

<bundles_post_ra>
// kernel: forward.1
= control target key start
LH: loop header
LB: loop body
LE: loop exit
PB: predicated region body
PF: predicated region fallthrough
CT: control target
= control target key end

     0   :  { %s2440_s9 = smov 0   ;;  %s2442_s10 = smov 0   ;;  %s3182_s0 = inlined_call_operand.vmem [shape: bf16[2,8,8,32], index: 0, kind: input, shape index: {}]   ;;  %s3183_s1 = inlined_call_operand.vmem [shape: bf16[288,128], index: 1, kind: input, shape index: {}]   ;;  %s3184_s2 = inlined_call_operand.vmem [shape: f32[2,40,128], index: 2, kind: output, shape index: {}]  }
   0x1   :  { %s2444_s11 = smov 0  }
   0x2 LB: > { %s24_s12 = sadd.s32 1, %s2415_s10  ;;  %p2140_p0 = scmp.ge.s32.totalorder %s2419_s11, 1  ;;  %s2419_s11 = sphi %s2444_s11, %s12_s11   ;;  %s2415_s10 = sphi %s2442_s10, %s3190_s10   ;;  %s2411_s9 = sphi %s2440_s9, %s3189_s9  }
   0x3   : > { %p26_p1 = scmp.ge.s32.totalorder %s24_s12, 2  ;;  %p126_p2 = scmp.lt.s32.totalorder %s2419_s11, 3 }
   0x5   : > { %s3192_s12 = smov (%p26_p1, %s24_s12), 0  ;;  %p127_p3 = pnand %p2140_p0, %p126_p2 }
   0x6   : > { %p151_p4 = scmp.lt.s32.totalorder (!%p127_p3), %s2411_s9, 1  ;;  %s2421_s17 = smov (!%p127_p3), 32  }
   0x7   : > { %130 = sbr.rel (%p127_p3) target bundleno = 587 (0x24b), region = 28  ;;  %s2422_s18 = smov (!%p127_p3), 64  }
   0x8   : > { %s2423_s19 = smov (!%p127_p3), 96  }
   0xc   : > { %s3194_s9 = smov (!%p151_p4, %s2411_s9), 1  ;;  %vm183_vm0 = vcmask 1040384   ;;  %vm187_vm1 = vcmask 1041409   ;;  %vm191_vm2 = vcmask 1042434   ;;  %vm385_vm3 = vsmask.f32 256 }
   0xd   : > { %s2335_s13 = sshll.u32 %s3194_s9, 5  ;;  %vm386_vm4 = vsmask.f32 1284  ;;  %vm388_vm6 = vsmask.f32 2312  ;;  %vm321_vm11 = vcmask 1043459  }
   0xe   : > { %s2464_s16 = scalar_lea.vmem %s3182_s0, %s2335_s13  ;;  %vm387_vm5 = vmor %vm385_vm3, %vm386_vm4  ;;  %vm390_vm8 = vsmask.f32 3340  ;;  %vm392_vm9 = vsmask.f32 4368  ;;  %vm394_vm13 = vsmask.f32 5396 }
   0xf   : > { %v165_v0 = vld [vmem:[%s2464_s16] sm:$0x7]  ;;  %v166_v1 = vld [vmem:[%s2464_s16 + $0x4] sm:$0x7]  ;;  %v2469_v2 = vld [vmem:[%s2464_s16 + $0x8] sm:$0x7] }
  0x10   : > { %v177_v3 = vrot.slane %v165_v0, 3  ;;  %v178_v4 = vrot.slane %v166_v1, 3  ;;  %v168_v5 = vld [vmem:[%s2464_s16 + $0xc] sm:$0x7]  ;;  %v2477_v10 = vrot.slane %v2469_v2, 3  ;;  %vm389_vm7 = vmor %vm387_vm5, %vm388_vm6  ;;  %vm292_vm6 = vcmask 254976  }
  0x11   : > { %v180_v13 = vrot.slane %v168_v5, 3  ;;  %v2485_v18 = vld [vmem:[%s2464_s16 + $0x14] sm:$0x7]  ;;  %v294_v23 = vld [vmem:[%s2464_s16] sm:$0xf]  ;;  %vm391_vm10 = vmor %vm389_vm7, %vm390_vm8  ;;  %vm617_vm7 = vcmask 517376  }
  0x12   : > { %v186_v6 = vsel %vm183_vm0, %v165_v0, %v177_v3  ;;  %v188_v7 = vsel %vm187_vm1, %v165_v0, %v177_v3  ;;  %v192_v8 = vsel %vm191_vm2, %v165_v0, %v177_v3  ;;  %v197_v9 = vsel %vm183_vm0, %v166_v1, %v178_v4  ;;  %v2495_v25 = vld [vmem:[%s2464_s16 + $0x4] sm:$0xf]  ;;  %vm393_vm12 = vmor %vm391_vm10, %vm392_vm9  ;;  %v2516_v38 = vld [vmem:[%s2464_s16 + $0x8] sm:$0xf]  ;;  %s2368_s4 = smul.u32 40, %s3194_s9 }
  0x13   : > { %v190_v11 = vrot.slane %v188_v7, 1  ;;  %v194_v12 = vrot.slane %v192_v8, 2  ;;  %240 = vst [vmem:[#allocation1] ss:$4 sm:$0xff] %v186_v6  ;;  %v210_v14 = vsel %vm191_vm2, %v2469_v2, %v2477_v10  ;;  %v216_v15 = vsel %vm187_vm1, %v168_v5, %v180_v13  ;;  %vm2509_vm15 = vmor %vm393_vm12, %vm394_vm13  ;;  %v297_v43 = vld [vmem:[%s2464_s16 + $0xc] sm:$0xf] }
  0x14   : > { %248 = vst [vmem:[#allocation1 + $0x3] ss:$4 sm:$0xff] %v197_v9  ;;  %v212_v16 = vrot.slane %v210_v14, 2  ;;  %v219_v17 = vsel %vm191_vm2, %v168_v5, %v180_v13  ;;  %v215_v19 = vsel %vm183_vm0, %v168_v5, %v180_v13  ;;  %v218_v20 = vrot.slane %v216_v15, 1  ;;  %v169_v49 = vld [vmem:[%s2464_s16 + $0x10] sm:$0x7]  ;;  %s163_s7 = scalar_lea.vmem %s3184_s2, %s2368_s4 }
  0x15   : > { %243 = vst [vmem:[#allocation1 + $0x1] ss:$4 sm:$0xff] %v190_v11  ;;  %v221_v21 = vrot.slane %v219_v17, 2  ;;  %v2492_v24 = vrot.slane %v2485_v18, 3  ;;  %v306_v26 = vrot.slane %v294_v23, 3  ;;  %v2504_v29 = vrot.slane %v2495_v25, 3 }
  0x16   : > { %246 = vst [vmem:[#allocation1 + $0x2] ss:$4 sm:$0xff] %v194_v12  ;;  %vm396_vm14 = vsmask.f32 6424  ;;  %v198_v36 = vsel %vm187_vm1, %v166_v1, %v178_v4  ;;  %v201_v37 = vsel %vm191_vm2, %v166_v1, %v178_v4  ;;  %vm398_vm3 = vsmask.f32 7452 }
  0x17   : > { %v234_v27 = vsel %vm187_vm1, %v2485_v18, %v2492_v24  ;;  %v237_v28 = vsel %vm191_vm2, %v2485_v18, %v2492_v24  ;;  %v315_v30 = vsel %vm187_vm1, %v294_v23, %v306_v26  ;;  %v318_v32 = vsel %vm191_vm2, %v294_v23, %v306_v26  ;;  %vm397_vm4 = vmor %vm2509_vm15, %vm396_vm14  ;;  %v2568_v9 = vld [vmem:[%s2464_s16 + $0x14] sm:$0xf] }
  0x18   : > { %v236_v31 = vrot.slane %v234_v27, 1  ;;  %v239_v33 = vrot.slane %v237_v28, 2  ;;  %v322_v34 = vsel %vm321_vm11, %v294_v23, %v306_v26  ;;  %v317_v39 = vrot.slane %v315_v30, 1  ;;  %vm2545_vm5 = vmor %vm397_vm4, %vm398_vm3 }
  0x19   : > { %v2521_v40 = vsel %vm187_vm1, %v2495_v25, %v2504_v29  ;;  %v200_v41 = vrot.slane %v198_v36, 1  ;;  %v314_v44 = vsel %vm183_vm0, %v294_v23, %v306_v26  ;;  %v320_v45 = vrot.slane %v318_v32, 2 }
  0x1a   : > { %v203_v46 = vrot.slane %v201_v37, 2  ;;  %v207_v47 = vsel %vm187_vm1, %v2469_v2, %v2477_v10  ;;  %v324_v48 = vrot.slane %v322_v34, 3  ;;  %v2535_v50 = vrot.slane %v2516_v38, 3 }
  0x1b   : > { %v330_v51 = vrot.slane %v2521_v40, 1  ;;  %v206_v52 = vsel %vm183_vm0, %v2469_v2, %v2477_v10  ;;  %v209_v53 = vrot.slane %v207_v47, 1  ;;  %v327_v54 = vsel %vm183_vm0, %v2495_v25, %v2504_v29  ;;  %251 = vst [vmem:[#allocation1 + $0x20] ss:$4 sm:$0xff] %v200_v41 }
  0x1c   : > { %v400_v55 = vshrl.u32 %v314_v44, 16  ;;  %v405_v56 = vshll.u32 %v317_v39, 16  ;;  %v309_v57 = vrot.slane %v297_v43, 3  ;;  %v408_v59 = vshrl.u32 %v317_v39, 16  ;;  %254 = vst [vmem:[#allocation1 + $0x21] ss:$4 sm:$0xff] %v203_v46 }
  0x1d   : > { %v2488_v22 = vld [vmem:[#allocation1] sm:$0xff]  ;;  %v413_v60 = vshll.u32 %v320_v45, 16  ;;  %v181_v61 = vrot.slane %v169_v49, 3  ;;  %v416_v62 = vshrl.u32 %v320_v45, 16  ;;  %v421_v63 = vshll.u32 %v324_v48, 16 }
  0x1e   : > { %263 = vst [vmem:[#allocation1] ss:$4 sm:$0xff] %v212_v16  ;;  %v2552_v0 = vsel %vm191_vm2, %v2516_v38, %v2535_v50  ;;  %v424_v1 = vshrl.u32 %v327_v54, 16  ;;  %v429_v2 = vshll.u32 %v330_v51, 16  ;;  %v346_v3 = vsel %vm321_vm11, %v2516_v38, %v2535_v50 }
  0x1f   : > { %264 = vst [vmem:[#allocation1 + $0x1] ss:$4 sm:$0xff] %v215_v19  ;;  %v407_v4 = vsel %vm2545_vm5, %v400_v55, %v405_v56  ;;  %v352_v5 = vsel %vm187_vm1, %v297_v43, %v309_v57  ;;  %v415_v6 = vsel %vm2545_vm5, %v408_v59, %v413_v60  ;;  %v225_v7 = vsel %vm187_vm1, %v169_v49, %v181_v61 }
  0x20   : > { %266 = vst [vmem:[#allocation1 + $0x2] ss:$4 sm:$0xff] %v218_v20  ;;  %v345_v10 = vrot.slane %v2552_v0, 2  ;;  %v355_v11 = vsel %vm191_vm2, %v297_v43, %v309_v57  ;;  %v423_v12 = vsel %vm2545_vm5, %v416_v62, %v421_v63  ;;  %v228_v13 = vsel %vm191_vm2, %v169_v49, %v181_v61 }
  0x21   : > { %268 = vst [vmem:[#allocation1 + $0x3] ss:$4 sm:$0xff] %v221_v21  ;;  %v348_v14 = vrot.slane %v346_v3, 3  ;;  %v351_v15 = vsel %vm183_vm0, %v297_v43, %v309_v57  ;;  %v358_v16 = vsel %vm321_vm11, %v297_v43, %v309_v57  ;;  %v431_v17 = vsel %vm2545_vm5, %v424_v1, %v429_v2 }
  0x22   : > { %256 = vst [vmem:[#allocation1 + $0x22] ss:$4 sm:$0xff] %v206_v52  ;;  %v354_v19 = vrot.slane %v352_v5, 1  ;;  %v224_v20 = vsel %vm183_vm0, %v169_v49, %v181_v61  ;;  %v227_v21 = vrot.slane %v225_v7, 1  ;;  %v331_v23 = vsel %vm191_vm2, %v2495_v25, %v2504_v29 }
  0x23   : > { %259 = vst [vmem:[#allocation1 + $0x23] ss:$4 sm:$0xff] %v209_v53  ;;  %v2584_v26 = vrot.slane %v2568_v9, 3  ;;  %v357_v27 = vrot.slane %v355_v11, 2  ;;  %v230_v28 = vrot.slane %v228_v13, 2  ;;  %v334_v30 = vsel %vm321_vm11, %v2495_v25, %v2504_v29 }
  0x24   : > { %v464_v32 = vshrl.u32 %v345_v10, 16  ;;  %v340_v34 = vsel %vm187_vm1, %v2516_v38, %v2535_v50  ;;  %v469_v35 = vshll.u32 %v348_v14, 16  ;;  %v472_v36 = vshrl.u32 %v351_v15, 16  ;;  %v298_v25 = vld [vmem:[%s2464_s16 + $0x10] sm:$0xf] }
  0x25   : > { %v233_v37 = vsel %vm183_vm0, %v2485_v18, %v2492_v24  ;;  %v333_v39 = vrot.slane %v331_v23, 2  ;;  %v477_v41 = vshll.u32 %v354_v19, 16  ;;  %v336_v29 = vrot.slane %v334_v30, 3 }
  0x26   : > { %v376_v43 = vsel %vm187_vm1, %v2568_v9, %v2584_v26  ;;  %v480_v44 = vshrl.u32 %v354_v19, 16  ;;  %v485_v45 = vshll.u32 %v357_v27, 16  ;;  %v342_v46 = vrot.slane %v340_v34, 1 }
  0x27   : > { %v379_v47 = vsel %vm191_vm2, %v2568_v9, %v2584_v26  ;;  %v488_v48 = vshrl.u32 %v357_v27, 16  ;;  %v339_v24 = vsel %vm183_vm0, %v2516_v38, %v2535_v50  ;;  %v471_v49 = vsel %vm2545_vm5, %v464_v32, %v469_v35 }
  0x28   : > { %v2523_v42 = vld [vmem:[#allocation1] sm:$0xff]  ;;  %v310_v52 = vrot.slane %v298_v25, 3  ;;  %v432_v53 = vshrl.u32 %v330_v51, 16  ;;  %v437_v54 = vshll.u32 %v333_v39, 16  ;;  %v382_v55 = vsel %vm321_vm11, %v2568_v9, %v2584_v26 }
  0x29   : > { %278 = vst [vmem:[#allocation1] ss:$4 sm:$0xff] %v236_v31  ;;  %v360_v31 = vrot.slane %v358_v16, 3  ;;  %v479_v56 = vsel %vm2545_vm5, %v472_v36, %v477_v41  ;;  %v440_v57 = vshrl.u32 %v333_v39, 16  ;;  %v445_v59 = vshll.u32 %v336_v29, 16 }
  0x2a   : > { %280 = vst [vmem:[#allocation1 + $0x1] ss:$4 sm:$0xff] %v239_v33  ;;  %v2589_v33 = vld [vmem:[#allocation1 + $0x20] sm:$0xff]  ;;  %v378_v60 = vrot.slane %v376_v43, 1  ;;  %v487_v38 = vsel %vm2545_vm5, %v480_v44, %v485_v45  ;;  %v448_v61 = vshrl.u32 %v339_v24, 16  ;;  %v453_v62 = vshll.u32 %v342_v46, 16 }
  0x2b   : > { %269 = vst [vmem:[#allocation1 + $0x20] ss:$4 sm:$0xff] %v224_v20  ;;  %v493_v18 = vshll.u32 %v360_v31, 16  ;;  %v381_v40 = vrot.slane %v379_v47, 2  ;;  %v461_v51 = vshll.u32 %v345_v10, 16  ;;  %v456_v0 = vshrl.u32 %v342_v46, 16 }
  0x2c   : > { %271 = vst [vmem:[#allocation1 + $0x21] ss:$4 sm:$0xff] %v227_v21  ;;  %v384_v1 = vrot.slane %v382_v55, 3  ;;  %v364_v2 = vsel %vm187_vm1, %v298_v25, %v310_v52  ;;  %v439_v3 = vsel %vm2545_vm5, %v432_v53, %v437_v54  ;;  %v447_v5 = vsel %vm2545_vm5, %v440_v57, %v445_v59  ;;  %v619_v43 = vld [vmem:[%s2464_s16] sm:$0xe] }
  0x2d   : > { %273 = vst [vmem:[#allocation1 + $0x22] ss:$4 sm:$0xff] %v230_v28  ;;  %v495_v63 = vsel %vm2545_vm5, %v488_v48, %v493_v18  ;;  %v370_v7 = vsel %vm321_vm11, %v298_v25, %v310_v52  ;;  %v455_v10 = vsel %vm2545_vm5, %v448_v61, %v453_v62  ;;  %v528_v11 = vshrl.u32 %v378_v60, 16  ;;  %v620_v45 = vld [vmem:[%s2464_s16 + $0x4] sm:$0xe] }
  0x2e   : > { %274 = vst [vmem:[#allocation1 + $0x23] ss:$4 sm:$0xff] %v233_v37  ;;  %v366_v13 = vrot.slane %v364_v2, 1  ;;  %v463_v14 = vsel %vm2545_vm5, %v456_v0, %v461_v51  ;;  %v536_v15 = vshrl.u32 %v381_v40, 16  ;;  %v541_v16 = vshll.u32 %v384_v1, 16 }
  0x2f   : > { %v372_v20 = vrot.slane %v370_v7, 3  ;;  %v375_v23 = vsel %vm183_vm0, %v2568_v9, %v2584_v26  ;;  %v525_v37 = vshll.u32 %v378_v60, 16  ;;  %v621_v47 = vld [vmem:[%s2464_s16 + $0x8] sm:$0xe]  ;;  %v624_v60 = vld [vmem:[%s2464_s16 + $0x14] sm:$0xe] }
  0x30   : > { %v501_v28 = vshll.u32 %v366_v13, 16  ;;  %v543_v30 = vsel %vm2545_vm5, %v536_v15, %v541_v16  ;;  %v504_v31 = vshrl.u32 %v366_v13, 16  ;;  %v520_v39 = vshrl.u32 %v375_v23, 16  ;;  %v2162_v7 = vld [vmem:[%s2464_s16 + $0x4] sm:$0x7] }
  0x31   : > { %v2565_v8 = vld [vmem:[#allocation1] sm:$0xff]  ;;  %v517_v36 = vshll.u32 %v372_v20, 16  ;;  %vm853_vm8 = vcmask 1044224   ;;  %vm1975_vm9 = vcmask 261120   ;;  %vm716_vm10 = vcmask 779776  }
  0x32   : > { %545 = vst [vmem:[#allocation1] ss:$4 sm:$0xff] %v407_v4  ;;  %v367_v4 = vsel %vm191_vm2, %v298_v25, %v310_v52  ;;  %v527_v29 = vsel %vm2545_vm5, %v520_v39, %v525_v37  ;;  %v2166_v39 = vld [vmem:[%s2464_s16 + $0x14] sm:$0x7]  ;;  %vm1779_vm12 = vcmask 257026  }
  0x33   : > { %548 = vst [vmem:[#allocation1 + $0x1] ss:$4 sm:$0xff] %v415_v6  ;;  %v369_v19 = vrot.slane %v367_v4, 2  ;;  %v2163_v4 = vld [vmem:[%s2464_s16 + $0x8] sm:$0x7] }
  0x34   : > { %551 = vst [vmem:[#allocation1 + $0x2] ss:$4 sm:$0xff] %v423_v12  ;;  %v533_v12 = vshll.u32 %v381_v40, 16 }
  0x35   : > { %554 = vst [vmem:[#allocation1 + $0x3] ss:$4 sm:$0xff] %v431_v17  ;;  %v2628_v6 = vld [vmem:[#allocation1 + $0x20] sm:$0xff]  ;;  %v363_v17 = vsel %vm183_vm0, %v298_v25, %v310_v52  ;;  %v509_v32 = vshll.u32 %v369_v19, 16  ;;  %v512_v35 = vshrl.u32 %v369_v19, 16 }
  0x36   : > { %557 = vst [vmem:[#allocation1 + $0x20] ss:$4 sm:$0xff] %v439_v3  ;;  %v535_v21 = vsel %vm2545_vm5, %v528_v11, %v533_v12  ;;  %v496_v27 = vshrl.u32 %v363_v17, 16  ;;  %v623_v52 = vld [vmem:[%s2464_s16 + $0x10] sm:$0xe]  ;;  %v731_v11 = vrot.slane %v2162_v7, 3 }
  0x37   : > { %560 = vst [vmem:[#allocation1 + $0x21] ss:$4 sm:$0xff] %v447_v5  ;;  %v511_v26 = vsel %vm2545_vm5, %v504_v31, %v509_v32  ;;  %v519_v41 = vsel %vm2545_vm5, %v512_v35, %v517_v36  ;;  %v2165_v36 = vld [vmem:[%s2464_s16 + $0x10] sm:$0x7] }
  0x38   : > { %563 = vst [vmem:[#allocation1 + $0x22] ss:$4 sm:$0xff] %v455_v10  ;;  %v503_v9 = vsel %vm2545_vm5, %v496_v27, %v501_v28  ;;  %v732_v10 = vrot.slane %v2163_v4, 3  ;;  %v743_v19 = vsel %vm191_vm2, %v2162_v7, %v731_v11  ;;  %v739_v28 = vsel %vm183_vm0, %v2162_v7, %v731_v11 }
  0x39   : > { %566 = vst [vmem:[#allocation1 + $0x23] ss:$4 sm:$0xff] %v463_v14  ;;  %v2164_v14 = vld [vmem:[%s2464_s16 + $0xc] sm:$0x7] }
  0x3a   : > { %v749_v12 = vsel %vm187_vm1, %v2163_v4, %v732_v10  ;;  %v752_v15 = vsel %vm191_vm2, %v2163_v4, %v732_v10  ;;  %v733_v17 = vrot.slane %v2164_v14, 3  ;;  %293 = vst.msk [vmem:[#allocation2 + $0x30] sm:$0x3] %vm292_vm6, %v2565_v8 }
  0x3b   : > { %v751_v16 = vrot.slane %v749_v12, 1  ;;  %v754_v20 = vrot.slane %v752_v15, 2 }
  0x3c   : > { %v2618_v50 = vld [vmem:[#allocation1] sm:$0xff]  ;;  %v757_v27 = vsel %vm183_vm0, %v2164_v14, %v733_v17  ;;  %v758_v31 = vsel %vm187_vm1, %v2164_v14, %v733_v17 }
  0x3d   : > { %572 = vst [vmem:[#allocation1] ss:$4 sm:$0xff] %v471_v49  ;;  %v622_v49 = vld [vmem:[%s2464_s16 + $0xc] sm:$0xe]  ;;  %v760_v37 = vrot.slane %v758_v31, 1 }
  0x3e   : > { %574 = vst [vmem:[#allocation1 + $0x1] ss:$4 sm:$0xff] %v479_v56 }
  0x3f   : > { %576 = vst [vmem:[#allocation1 + $0x2] ss:$4 sm:$0xff] %v487_v38 }
  0x40   : > { %578 = vst [vmem:[#allocation1 + $0x3] ss:$4 sm:$0xff] %v495_v63  ;;  %v2650_v25 = vld [vmem:[#allocation1 + $0x20] sm:$0xff] }
  0x41   : > { %580 = vst [vmem:[#allocation1 + $0x20] ss:$4 sm:$0xff] %v503_v9  ;;  %v734_v9 = vrot.slane %v2165_v36, 3 }
  0x42   : > { %582 = vst [vmem:[#allocation1 + $0x21] ss:$4 sm:$0xff] %v511_v26  ;;  %v761_v26 = vsel %vm191_vm2, %v2164_v14, %v733_v17 }
  0x43   : > { %584 = vst [vmem:[#allocation1 + $0x22] ss:$4 sm:$0xff] %v519_v41  ;;  %v735_v41 = vrot.slane %v2166_v39, 3 }
  0x44   : > { %586 = vst [vmem:[#allocation1 + $0x23] ss:$4 sm:$0xff] %v527_v29  ;;  %v2169_v29 = vld [vmem:[%s2464_s16 + $0x8] sm:$0xf] }
  0x47   : > { %v587_v34 = vld [vmem:[#allocation1] sm:$0xff] }
  0x48   : > { %601 = vrot.lane.b32.xlu0 %v587_v34, %s2421_s17  ;;  %592 = vst [vmem:[#allocation1] ss:$4 sm:$0xff] %v535_v21  ;;  %v740_v21 = vsel %vm187_vm1, %v2162_v7, %v731_v11  ;;  %v748_v34 = vsel %vm183_vm0, %v2163_v4, %v732_v10  ;;  %v2172_v7 = vld [vmem:[%s2464_s16 + $0x14] sm:$0xf] }
  0x49   : > { %594 = vst [vmem:[#allocation1 + $0x1] ss:$4 sm:$0xff] %v543_v30  ;;  %v745_v30 = vrot.slane %v743_v19, 2  ;;  %v742_v32 = vrot.slane %v740_v21, 1  ;;  %v2719_v19 = vld [vmem:[%s2464_s16 + $0x18] sm:$0xf] }
  0x4b   : > { %v589_v46 = vld [vmem:[#allocation1 + $0x20] sm:$0xff] }
  0x4c   : > { %603 = vrot.lane.b32.xlu1 %v589_v46, %s2421_s17  ;;  %634 = vst [vmem:[#allocation1 + $0x20] sm:$0xff] %v620_v45  ;;  %v763_v45 = vrot.slane %v761_v26, 2  ;;  %v770_v46 = vsel %vm191_vm2, %v2165_v36, %v734_v9 }
  0x50   : > { %v595_v44 = vld [vmem:[#allocation1] sm:$0xff] }
  0x51   : > { %605 = vrot.lane.b32.xlu0 %v595_v44, %s2421_s17  ;;  %626 = vst [vmem:[#allocation1] sm:$0xff] %v619_v43  ;;  %v767_v43 = vsel %vm187_vm1, %v2165_v36, %v734_v9  ;;  %v2167_v44 = vld [vmem:[%s2464_s16 + $0x18] sm:$0x7] }
  0x53   : > { %v636_v53 = vld [vmem:[#allocation1 + $0x21] ss:$4 sm:$0xff]  ;;  %v638_v54 = vld [vmem:[#allocation1 + $0x22] ss:$4 sm:$0xff]  ;;  %v640_v55 = vld [vmem:[#allocation1 + $0x23] ss:$4 sm:$0xff] }
  0x54   : > { %647 = vst [vmem:[#allocation1 + $0x20] sm:$0xff] %v622_v49  ;;  %v776_v49 = vsel %vm187_vm1, %v2166_v39, %v735_v41 }
  0x58   : > { %v628_v48 = vld [vmem:[#allocation1 + $0x1] ss:$4 sm:$0xff]  ;;  %v630_v18 = vld [vmem:[#allocation1 + $0x2] ss:$4 sm:$0xff]  ;;  %v632_v24 = vld [vmem:[#allocation1 + $0x3] ss:$4 sm:$0xff] }
  0x59   : > { %642 = vst [vmem:[#allocation1] sm:$0xff] %v621_v47  ;;  %v2689_v47 = vld [vmem:[%s2464_s16 + $0xc] sm:$0xf] }
  0x5b   : > { %v648_v38 = vld [vmem:[#allocation1 + $0x21] ss:$4 sm:$0xff]  ;;  %v649_v61 = vld [vmem:[#allocation1 + $0x22] ss:$4 sm:$0xff]  ;;  %v650_v62 = vld [vmem:[#allocation1 + $0x23] ss:$4 sm:$0xff] }
  0x5c   : > { %657 = vst [vmem:[#allocation1 + $0x20] sm:$0xff] %v624_v60  ;;  %v778_v60 = vrot.slane %v776_v49, 1 }
  0x5d   : > { %669 = vst [vmem:[#allocation1 + $0x20] ss:$4 sm:$0xff] %v638_v54  ;;  %v779_v54 = vsel %vm191_vm2, %v2166_v39, %v735_v41 }
  0x60   : > { %v643_v56 = vld [vmem:[#allocation1 + $0x1] ss:$4 sm:$0xff]  ;;  %v644_v57 = vld [vmem:[#allocation1 + $0x2] ss:$4 sm:$0xff]  ;;  %v645_v59 = vld [vmem:[#allocation1 + $0x3] ss:$4 sm:$0xff] }
  0x61   : > { %652 = vst [vmem:[#allocation1] sm:$0xff] %v623_v52  ;;  %v736_v52 = vrot.slane %v2167_v44, 3 }
  0x62   : > { %661 = vst [vmem:[#allocation1] ss:$4 sm:$0xff] %v628_v48  ;;  %v873_v48 = vrot.slane %v2169_v29, 3 }
  0x63   : > { %v658_v0 = vld [vmem:[#allocation1 + $0x21] ss:$4 sm:$0xff]  ;;  %v659_v1 = vld [vmem:[#allocation1 + $0x22] ss:$4 sm:$0xff]  ;;  %v660_v2 = vld [vmem:[#allocation1 + $0x23] ss:$4 sm:$0xff]  ;;  %v784_v4 = vsel %vm183_vm0, %v2167_v44, %v736_v52 }
  0x64   : > { %671 = vst [vmem:[#allocation1 + $0x21] ss:$4 sm:$0xff] %v640_v55 }
  0x65   : > { %673 = vst [vmem:[#allocation1 + $0x22] ss:$4 sm:$0xff] %v643_v56  ;;  %v2168_v56 = vld [vmem:[%s2464_s16 + $0x4] sm:$0xf] }
  0x66   : > { %675 = vst [vmem:[#allocation1 + $0x23] ss:$4 sm:$0xff] %v644_v57  ;;  %v874_v57 = vrot.slane %v2689_v47, 3 }
  0x68   : > { %v653_v40 = vld [vmem:[#allocation1 + $0x1] ss:$4 sm:$0xff]  ;;  %v654_v51 = vld [vmem:[#allocation1 + $0x2] ss:$4 sm:$0xff]  ;;  %v655_v63 = vld [vmem:[#allocation1 + $0x3] ss:$4 sm:$0xff]  ;;  %v2715_v12 = vsel %vm191_vm2, %v2689_v47, %v874_v57 }
  0x69   : > { %663 = vst [vmem:[#allocation1 + $0x1] ss:$4 sm:$0xff] %v630_v18  ;;  %v766_v18 = vsel %vm183_vm0, %v2165_v36, %v734_v9 }
  0x6a   : > { %665 = vst [vmem:[#allocation1 + $0x2] ss:$4 sm:$0xff] %v632_v24  ;;  %v769_v24 = vrot.slane %v767_v43, 1 }
  0x6b   : > { %667 = vst [vmem:[#allocation1 + $0x3] ss:$4 sm:$0xff] %v636_v53  ;;  %v772_v53 = vrot.slane %v770_v46, 2 }
  0x6d   : > { %v2665_v5 = vld [vmem:[#allocation1 + $0x20] sm:$0xff] }
  0x6e   : > { %684 = vst [vmem:[#allocation1 + $0x20] ss:$4 sm:$0xff] %v653_v40  ;;  %v781_v40 = vrot.slane %v779_v54, 2 }
  0x6f   : > { %685 = vst [vmem:[#allocation1 + $0x21] ss:$4 sm:$0xff] %v654_v51  ;;  %v872_v51 = vrot.slane %v2168_v56, 3 }
  0x70   : > { %686 = vst [vmem:[#allocation1 + $0x22] ss:$4 sm:$0xff] %v655_v63  ;;  %v899_v63 = vsel %vm321_vm11, %v2169_v29, %v873_v48 }
  0x71   : > { %687 = vst [vmem:[#allocation1 + $0x23] ss:$4 sm:$0xff] %v658_v0  ;;  %v785_v0 = vsel %vm187_vm1, %v2167_v44, %v736_v52  ;;  %v884_v21 = vsel %vm191_vm2, %v2168_v56, %v872_v51 }
  0x72   : > { %v2662_v3 = vld [vmem:[#allocation1] sm:$0xff]  ;;  %v787_v14 = vrot.slane %v785_v0, 1  ;;  %v886_v43 = vrot.slane %v884_v21, 2 }
  0x73   : > { %680 = vst [vmem:[#allocation1] ss:$4 sm:$0xff] %v645_v59  ;;  %v775_v59 = vsel %vm183_vm0, %v2166_v39, %v735_v41  ;;  %v2732_v41 = vrot.slane %v2719_v19, 3 }
  0x74   : > { %681 = vst [vmem:[#allocation1 + $0x1] ss:$4 sm:$0xff] %v648_v38 }
  0x75   : > { %682 = vst [vmem:[#allocation1 + $0x2] ss:$4 sm:$0xff] %v649_v61  ;;  %v2702_v61 = vsel %vm187_vm1, %v2169_v29, %v873_v48 }
  0x76   : > { %683 = vst [vmem:[#allocation1 + $0x3] ss:$4 sm:$0xff] %v650_v62  ;;  %v896_v62 = vsel %vm191_vm2, %v2169_v29, %v873_v48  ;;  %v895_v10 = vrot.slane %v2702_v61, 1 }
  0x77   : > { %v898_v11 = vrot.slane %v896_v62, 2 }
  0x78   : > { %v690_v23 = vld [vmem:[#allocation1 + $0x20] sm:$0xff]  ;;  %v982_v31 = vshrl.u32 %v895_v10, 16 }
  0x79   : > { %802 = vst [vmem:[#allocation1 + $0x20] ss:$4 sm:$0xff] %v751_v16  ;;  %702 = vrot.lane.b32.xlu0 %v690_v23, %s2422_s18  ;;  %v881_v16 = vsel %vm187_vm1, %v2168_v56, %v872_v51  ;;  %v904_v23 = vsel %vm183_vm0, %v2689_v47, %v874_v57  ;;  %v990_v39 = vshrl.u32 %v898_v11, 16 }
  0x7a   : > { %805 = vst [vmem:[#allocation1 + $0x21] ss:$4 sm:$0xff] %v754_v20  ;;  %v876_v20 = vrot.slane %v2172_v7, 3  ;;  %v883_v36 = vrot.slane %v881_v16, 1 }
  0x7b   : > { %807 = vst [vmem:[#allocation1 + $0x22] ss:$4 sm:$0xff] %v757_v27  ;;  %v910_v27 = vrot.slane %v2715_v12, 2 }
  0x7c   : > { %810 = vst [vmem:[#allocation1 + $0x23] ss:$4 sm:$0xff] %v760_v37  ;;  %v892_v37 = vsel %vm183_vm0, %v2169_v29, %v873_v48  ;;  %v911_v48 = vsel %vm321_vm11, %v2689_v47, %v874_v57  ;;  %v935_v54 = vsel %vm321_vm11, %v2172_v7, %v876_v20 }
  0x7d   : > { %v688_v13 = vld [vmem:[#allocation1] sm:$0xff]  ;;  %v1011_v49 = vshll.u32 %v910_v27, 16 }
  0x7e   : > { %692 = vst [vmem:[#allocation1] ss:$4 sm:$0xff] %v659_v1  ;;  %700 = vrot.lane.b32.xlu2 %v688_v13, %s2422_s18  ;;  %v788_v1 = vsel %vm191_vm2, %v2167_v44, %v736_v52  ;;  %v901_v13 = vrot.slane %v899_v63, 3  ;;  %v998_v44 = vshrl.u32 %v904_v23, 16  ;;  %v932_v52 = vsel %vm191_vm2, %v2172_v7, %v876_v20 }
  0x7f   : > { %693 = vst [vmem:[#allocation1 + $0x1] ss:$4 sm:$0xff] %v660_v2  ;;  %v905_v2 = vsel %vm187_vm1, %v2689_v47, %v874_v57  ;;  %v790_v15 = vrot.slane %v788_v1, 2  ;;  %v2752_v57 = vsel %vm187_vm1, %v2719_v19, %v2732_v41  ;;  %v966_v63 = vshrl.u32 %v886_v43, 16 }
  0x80   : > { %v907_v17 = vrot.slane %v905_v2, 1  ;;  %v995_v9 = vshll.u32 %v901_v13, 16  ;;  %v928_v2 = vsel %vm183_vm0, %v2172_v7, %v876_v20  ;;  %v979_v13 = vshll.u32 %v895_v10, 16 }
  0x81   : > { %v943_v23 = vrot.slane %v2752_v57, 1  ;;  %v940_v10 = vsel %vm183_vm0, %v2719_v19, %v2732_v41 }
  0x83   : > { %v2699_v38 = vld [vmem:[#allocation1 + $0x20] sm:$0xff] }
  0x84   : > { %822 = vst [vmem:[#allocation1 + $0x20] ss:$4 sm:$0xff] %v775_v59  ;;  %v955_v59 = vshll.u32 %v883_v36, 16 }
  0x85   : > { %824 = vst [vmem:[#allocation1 + $0x21] ss:$4 sm:$0xff] %v778_v60  ;;  %v997_v60 = vsel %vm2545_vm5, %v990_v39, %v995_v9 }
  0x86   : > { %v2679_v35 = vld [vmem:[#allocation1] sm:$0xff]  ;;  %826 = vst [vmem:[#allocation1 + $0x22] ss:$4 sm:$0xff] %v781_v40  ;;  %v958_v40 = vshrl.u32 %v883_v36, 16 }
  0x87   : > { %791 = vst [vmem:[#allocation1] ss:$4 sm:$0xff] %v739_v28  ;;  %v880_v28 = vsel %vm183_vm0, %v2168_v56, %v872_v51 }
  0x88   : > { %797 = vst [vmem:[#allocation1 + $0x2] ss:$4 sm:$0xff] %v745_v30  ;;  %v887_v30 = vsel %vm321_vm11, %v2168_v56, %v872_v51  ;;  %v950_v56 = vshrl.u32 %v880_v28, 16  ;;  %v963_v51 = vshll.u32 %v886_v43, 16  ;;  %v1046_v28 = vshrl.u32 %v928_v2, 16 }
  0x89   : > { %799 = vst [vmem:[#allocation1 + $0x3] ss:$4 sm:$0xff] %v748_v34  ;;  %v2728_v34 = vld [vmem:[%s2464_s16 + $0x10] sm:$0xf]  ;;  %v889_v46 = vrot.slane %v887_v30, 3 }
  0x8a   : > { %794 = vst [vmem:[#allocation1 + $0x1] ss:$4 sm:$0xff] %v742_v32  ;;  %v987_v32 = vshll.u32 %v898_v11, 16  ;;  %v875_v29 = vrot.slane %v2728_v34, 3  ;;  %v974_v11 = vshrl.u32 %v892_v37, 16  ;;  %v957_v16 = vsel %vm2545_vm5, %v950_v56, %v955_v59 }
  0x8b   : > { %827 = vst [vmem:[#allocation1 + $0x23] ss:$4 sm:$0xff] %v784_v4  ;;  %v971_v0 = vshll.u32 %v889_v46, 16  ;;  %v934_v4 = vrot.slane %v932_v52, 2  ;;  %v1070_v46 = vshrl.u32 %v940_v10, 16 }
  0x8c   : > { %v920_v21 = vsel %vm191_vm2, %v2728_v34, %v875_v29  ;;  %v981_v36 = vsel %vm2545_vm5, %v974_v11, %v979_v13 }
  0x8d   : > { %v1059_v39 = vshll.u32 %v934_v4, 16 }
  0x91   : > { %v2694_v55 = vld [vmem:[#allocation1] sm:$0xff] }
  0x92   : > { %816 = vst [vmem:[#allocation1] ss:$4 sm:$0xff] %v763_v45  ;;  %v1003_v45 = vshll.u32 %v907_v17, 16  ;;  %v830_v61 = vld [vmem:[#allocation1 + $0x20] sm:$0xff] }
  0x93   : > { %817 = vst [vmem:[#allocation1 + $0x1] ss:$4 sm:$0xff] %v766_v18  ;;  %v929_v18 = vsel %vm187_vm1, %v2172_v7, %v876_v20  ;;  %844 = vrot.lane.b32.xlu2 %v830_v61, %s2423_s19  ;;  %v965_v7 = vsel %vm2545_vm5, %v958_v40, %v963_v51  ;;  %v973_v20 = vsel %vm2545_vm5, %v966_v63, %v971_v0 }
  0x94   : > { %819 = vst [vmem:[#allocation1 + $0x2] ss:$4 sm:$0xff] %v769_v24  ;;  %v1006_v24 = vshrl.u32 %v907_v17, 16  ;;  %v931_v62 = vrot.slane %v929_v18, 1  ;;  %v1005_v47 = vsel %vm2545_vm5, %v998_v44, %v1003_v45  ;;  %v917_v17 = vsel %vm187_vm1, %v2728_v34, %v875_v29 }
  0x95   : > { %821 = vst [vmem:[#allocation1 + $0x3] ss:$4 sm:$0xff] %v772_v53  ;;  %v989_v53 = vsel %vm2545_vm5, %v982_v31, %v987_v32  ;;  %v923_v32 = vsel %vm321_vm11, %v2728_v34, %v875_v29  ;;  %v919_v9 = vrot.slane %v917_v17, 1  ;;  %v916_v44 = vsel %vm183_vm0, %v2728_v34, %v875_v29 }
  0x96   : > { %v1013_v1 = vsel %vm2545_vm5, %v1006_v24, %v1011_v49  ;;  %1107 = vst [vmem:[#allocation1 + $0x20] ss:$4 sm:$0xff] %v989_v53  ;;  %v1051_v30 = vshll.u32 %v931_v62, 16  ;;  %v1054_v37 = vshrl.u32 %v931_v62, 16  ;;  %v922_v45 = vrot.slane %v920_v21, 2 }
  0x97   : > { %1110 = vst [vmem:[#allocation1 + $0x21] ss:$4 sm:$0xff] %v997_v60  ;;  %v1075_v18 = vshll.u32 %v943_v23, 16  ;;  %v925_v24 = vrot.slane %v923_v32, 3  ;;  %v1027_v56 = vshll.u32 %v919_v9, 16  ;;  %v1030_v59 = vshrl.u32 %v919_v9, 16 }
  0x98   : > { %1113 = vst [vmem:[#allocation1 + $0x22] ss:$4 sm:$0xff] %v1005_v47  ;;  %v1053_v49 = vsel %vm2545_vm5, %v1046_v28, %v1051_v30  ;;  %v1061_v53 = vsel %vm2545_vm5, %v1054_v37, %v1059_v39  ;;  %v1035_v60 = vshll.u32 %v922_v45, 16  ;;  %v1038_v62 = vshrl.u32 %v922_v45, 16  ;;  %v2195_v21 = vld [vmem:[%s2464_s16 + $0x10] sm:$0xe] }
  0x99   : > { %1116 = vst [vmem:[#allocation1 + $0x23] ss:$4 sm:$0xff] %v1013_v1  ;;  %v1077_v61 = vsel %vm2545_vm5, %v1070_v46, %v1075_v18  ;;  %v1043_v12 = vshll.u32 %v925_v24, 16  ;;  %v947_v51 = vsel %vm321_vm11, %v2719_v19, %v2732_v41  ;;  %v2197_v30 = vld [vmem:[%s2464_s16 + $0x18] sm:$0xe] }
  0x9a   : > { %v1037_v57 = vsel %vm2545_vm5, %v1030_v59, %v1035_v60  ;;  %v949_v2 = vrot.slane %v947_v51, 3  ;;  %v2194_v39 = vld [vmem:[%s2464_s16 + $0xc] sm:$0xe]  ;;  %v2196_v45 = vld [vmem:[%s2464_s16 + $0x14] sm:$0xe] }
  0x9b   : > { %v1045_v1 = vsel %vm2545_vm5, %v1038_v62, %v1043_v12  ;;  %v2829_v59 = vld [vmem:[%s2464_s16 + $0x10] sm:$0x7] }
  0x9c   : > { %v828_v26 = vld [vmem:[#allocation1] sm:$0xff]  ;;  %v1091_v13 = vshll.u32 %v949_v2, 16 }
  0x9d   : > { %842 = vrot.lane.b32.xlu1 %v828_v26, %s2423_s19  ;;  %833 = vst [vmem:[#allocation1] ss:$4 sm:$0xff] %v787_v14  ;;  %v913_v14 = vrot.slane %v911_v48, 3  ;;  %v1062_v26 = vshrl.u32 %v934_v4, 16  ;;  %v1014_v48 = vshrl.u32 %v910_v27, 16  ;;  %v944_v27 = vsel %vm191_vm2, %v2719_v19, %v2732_v41 }
  0x9e   : > { %835 = vst [vmem:[#allocation1 + $0x1] ss:$4 sm:$0xff] %v790_v15  ;;  %v937_v15 = vrot.slane %v935_v54, 3  ;;  %v1022_v54 = vshrl.u32 %v916_v44, 16  ;;  %v946_v0 = vrot.slane %v944_v27, 2  ;;  %v1078_v19 = vshrl.u32 %v943_v23, 16 }
  0x9f   : > { %v1019_v52 = vshll.u32 %v913_v14, 16  ;;  %v2193_v4 = vld [vmem:[%s2464_s16 + $0x8] sm:$0xe] }
  0xa0   : > { %v1067_v43 = vshll.u32 %v937_v15, 16  ;;  %v2788_v29 = vld [vmem:[#allocation1 + $0x20] sm:$0xff]  ;;  %v1029_v47 = vsel %vm2545_vm5, %v1022_v54, %v1027_v56  ;;  %v1083_v41 = vshll.u32 %v946_v0, 16  ;;  %v1086_v11 = vshrl.u32 %v946_v0, 16  ;;  %v2825_v56 = vld [vmem:[%s2464_s16 + $0xc] sm:$0x7] }
  0xa1   : > { %1128 = vst [vmem:[#allocation1 + $0x20] ss:$4 sm:$0xff] %v1053_v49  ;;  %v1021_v40 = vsel %vm2545_vm5, %v1014_v48, %v1019_v52  ;;  %v1263_v60 = vrot.slane %v2825_v56, 3 }
  0xa2   : > { %v1069_v34 = vsel %vm2545_vm5, %v1062_v26, %v1067_v43  ;;  %1130 = vst [vmem:[#allocation1 + $0x21] ss:$4 sm:$0xff] %v1061_v53  ;;  %v1085_v15 = vsel %vm2545_vm5, %v1078_v19, %v1083_v41  ;;  %v2852_v41 = vld [vmem:[%s2464_s16 + $0x10] sm:$0xf] }
  0xa3   : > { %1132 = vst [vmem:[#allocation1 + $0x22] ss:$4 sm:$0xff] %v1069_v34  ;;  %v1280_v62 = vsel %vm187_vm1, %v2825_v56, %v1263_v60  ;;  %v1283_v12 = vsel %vm191_vm2, %v2825_v56, %v1263_v60 }
  0xa4   : > { %1134 = vst [vmem:[#allocation1 + $0x23] ss:$4 sm:$0xff] %v1077_v61  ;;  %v2833_v61 = vrot.slane %v2829_v59, 3 }
  0xa5   : > { %v2772_v31 = vld [vmem:[#allocation1] sm:$0xff] }
  0xa6   : > { %1095 = vst [vmem:[#allocation1] ss:$4 sm:$0xff] %v957_v16  ;;  %v1093_v16 = vsel %vm2545_vm5, %v1086_v11, %v1091_v13  ;;  %v1289_v51 = vsel %vm187_vm1, %v2829_v59, %v2833_v61  ;;  %v2858_v13 = vld [vmem:[%s2464_s16 + $0x1c] sm:$0x7] }
  0xa7   : > { %1098 = vst [vmem:[#allocation1 + $0x1] ss:$4 sm:$0xff] %v965_v7  ;;  %v1291_v2 = vrot.slane %v1289_v51, 1 }
  0xa8   : > { %1101 = vst [vmem:[#allocation1 + $0x2] ss:$4 sm:$0xff] %v973_v20  ;;  %v2192_v20 = vld [vmem:[%s2464_s16 + $0x4] sm:$0xe] }
  0xa9   : > { %1104 = vst [vmem:[#allocation1 + $0x3] ss:$4 sm:$0xff] %v981_v36 }
  0xab   : > { %v2809_v14 = vld [vmem:[#allocation1 + $0x20] sm:$0xff] }
  0xac   : > { %1167 = vst [vmem:[#allocation1 + $0x20] sm:$0xff] %v2193_v4  ;;  %v2849_v4 = vld [vmem:[%s2464_s16 + $0xc] sm:$0xf] }
  0xad   : > { %v2855_v11 = vrot.slane %v2849_v4, 3 }
  0xb0   : > { %v2804_v63 = vld [vmem:[#allocation1] sm:$0xff] }
  0xb1   : > { %1120 = vst [vmem:[#allocation1] ss:$4 sm:$0xff] %v1021_v40  ;;  %v1282_v40 = vrot.slane %v1280_v62, 1  ;;  %v2902_v62 = vld [vmem:[%s2464_s16 + $0x1c] sm:$0xf] }
  0xb2   : > { %1122 = vst [vmem:[#allocation1 + $0x1] ss:$4 sm:$0xff] %v1029_v47  ;;  %v1285_v47 = vrot.slane %v1283_v12, 2 }
  0xb3   : > { %1124 = vst [vmem:[#allocation1 + $0x2] ss:$4 sm:$0xff] %v1037_v57  ;;  %v1169_v23 = vld [vmem:[#allocation1 + $0x21] ss:$4 sm:$0xff]  ;;  %v1171_v7 = vld [vmem:[#allocation1 + $0x22] ss:$4 sm:$0xff] }
  0xb4   : > { %1126 = vst [vmem:[#allocation1 + $0x3] ss:$4 sm:$0xff] %v1045_v1  ;;  %v1173_v10 = vld [vmem:[#allocation1 + $0x23] ss:$4 sm:$0xff]  ;;  %v2202_v57 = vld [vmem:[%s2464_s16 + $0x18] sm:$0x7]  ;;  %v1288_v1 = vsel %vm183_vm0, %v2829_v59, %v2833_v61 }
  0xb5   : > { %1180 = vst [vmem:[#allocation1 + $0x20] sm:$0xff] %v2195_v21  ;;  %v1266_v19 = vrot.slane %v2202_v57, 3 }
  0xbb   : > { %v2815_v17 = vld [vmem:[#allocation1] sm:$0xff] }
  0xbc   : > { %1138 = vst [vmem:[#allocation1] ss:$4 sm:$0xff] %v1085_v15  ;;  %v1181_v32 = vld [vmem:[#allocation1 + $0x21] ss:$4 sm:$0xff]  ;;  %v1182_v36 = vld [vmem:[#allocation1 + $0x22] ss:$4 sm:$0xff] }
  0xbd   : > { %1140 = vst [vmem:[#allocation1 + $0x1] ss:$4 sm:$0xff] %v1093_v16  ;;  %v1183_v37 = vld [vmem:[#allocation1 + $0x23] ss:$4 sm:$0xff]  ;;  %v2198_v15 = vld [vmem:[%s2464_s16 + $0x8] sm:$0x7]  ;;  %v1307_v16 = vsel %vm187_vm1, %v2202_v57, %v1266_v19 }
  0xbe   : > { %1190 = vst [vmem:[#allocation1 + $0x20] sm:$0xff] %v2197_v30  ;;  %v1262_v30 = vrot.slane %v2198_v15, 3 }
  0xbf   : > { %1202 = vst [vmem:[#allocation1 + $0x20] ss:$4 sm:$0xff] %v1171_v7  ;;  %v2864_v7 = vrot.slane %v2852_v41, 3 }
  0xc1   : > { %v1433_v12 = vsel %vm183_vm0, %v2852_v41, %v2864_v7 }
  0xc4   : > { %v2819_v28 = vld [vmem:[#allocation1] sm:$0xff] }
  0xc5   : > { %1159 = vst [vmem:[#allocation1] sm:$0xff] %v2192_v20  ;;  %v1191_v44 = vld [vmem:[#allocation1 + $0x21] ss:$4 sm:$0xff]  ;;  %v1192_v46 = vld [vmem:[#allocation1 + $0x22] ss:$4 sm:$0xff]  ;;  %v2873_v20 = vsel %vm187_vm1, %v2849_v4, %v2855_v11 }
  0xc6   : > { %1204 = vst [vmem:[#allocation1 + $0x21] ss:$4 sm:$0xff] %v1173_v10  ;;  %v1193_v48 = vld [vmem:[#allocation1 + $0x23] ss:$4 sm:$0xff]  ;;  %v2868_v10 = vrot.slane %v2858_v13, 3 }
  0xc7   : > { %1151 = vst.msk [vmem:[#allocation2 + $0x34] sm:$0x3] %vm292_vm6, %v2819_v28  ;;  %v2232_v28 = vld [vmem:[%s2464_s16 + $0x18] sm:$0xe] }
  0xcc   : > { %v1161_v9 = vld [vmem:[#allocation1 + $0x1] ss:$4 sm:$0xff]  ;;  %v1163_v26 = vld [vmem:[#allocation1 + $0x2] ss:$4 sm:$0xff]  ;;  %v1165_v43 = vld [vmem:[#allocation1 + $0x3] ss:$4 sm:$0xff] }
  0xcd   : > { %1175 = vst [vmem:[#allocation1] sm:$0xff] %v2194_v39 }
  0xd4   : > { %v1176_v18 = vld [vmem:[#allocation1 + $0x1] ss:$4 sm:$0xff]  ;;  %v1177_v24 = vld [vmem:[#allocation1 + $0x2] ss:$4 sm:$0xff]  ;;  %v1178_v49 = vld [vmem:[#allocation1 + $0x3] ss:$4 sm:$0xff] }
  0xd5   : > { %1185 = vst [vmem:[#allocation1] sm:$0xff] %v2196_v45  ;;  %v2889_v45 = vsel %vm191_vm2, %v2852_v41, %v2864_v7 }
  0xd6   : > { %1194 = vst [vmem:[#allocation1] ss:$4 sm:$0xff] %v1161_v9  ;;  %v1428_v9 = vsel %vm321_vm11, %v2849_v4, %v2855_v11 }
  0xd7   : > { %1206 = vst [vmem:[#allocation1 + $0x22] ss:$4 sm:$0xff] %v1176_v18 }
  0xd8   : > { %1208 = vst [vmem:[#allocation1 + $0x23] ss:$4 sm:$0xff] %v1177_v24  ;;  %v1271_v24 = vsel %vm187_vm1, %v2198_v15, %v1262_v30  ;;  %v701_v58 = vpop.permute.xlu2 %700 }
  0xd9   : > { %v1273_v51 = vrot.slane %v1271_v24, 1 }
  0xdc   : > { %v1186_v52 = vld [vmem:[#allocation1 + $0x1] ss:$4 sm:$0xff]  ;;  %v1187_v53 = vld [vmem:[#allocation1 + $0x2] ss:$4 sm:$0xff]  ;;  %v1188_v54 = vld [vmem:[#allocation1 + $0x3] ss:$4 sm:$0xff] }
  0xdd   : > { %1196 = vst [vmem:[#allocation1 + $0x1] ss:$4 sm:$0xff] %v1163_v26 }
  0xde   : > { %1198 = vst [vmem:[#allocation1 + $0x2] ss:$4 sm:$0xff] %v1165_v43  ;;  %v1424_v43 = vrot.slane %v2873_v20, 1 }
  0xdf   : > { %1200 = vst [vmem:[#allocation1 + $0x3] ss:$4 sm:$0xff] %v1169_v23  ;;  %v1211_v34 = vld [vmem:[#allocation1 + $0x20] sm:$0xff]  ;;  %v1310_v23 = vsel %vm191_vm2, %v2202_v57, %v1266_v19 }
  0xe0   : > { %1217 = vst [vmem:[#allocation1 + $0x20] ss:$4 sm:$0xff] %v1186_v52  ;;  %1231 = vrot.lane.b32.xlu0 %v1211_v34, %s2421_s17  ;;  %v1312_v39 = vrot.slane %v1310_v23, 2  ;;  %v1274_v52 = vsel %vm191_vm2, %v2198_v15, %v1262_v30  ;;  %v1439_v34 = vrot.slane %v2889_v45, 2 }
  0xe1   : > { %1218 = vst [vmem:[#allocation1 + $0x21] ss:$4 sm:$0xff] %v1187_v53  ;;  %v1279_v53 = vsel %vm183_vm0, %v2825_v56, %v1263_v60  ;;  %v1276_v60 = vrot.slane %v1274_v52, 2 }
  0xe2   : > { %1219 = vst [vmem:[#allocation1 + $0x22] ss:$4 sm:$0xff] %v1188_v54 }
  0xe3   : > { %1220 = vst [vmem:[#allocation1 + $0x23] ss:$4 sm:$0xff] %v1191_v44  ;;  %v1434_v44 = vsel %vm187_vm1, %v2852_v41, %v2864_v7 }
  0xe4   : > { %v1436_v54 = vrot.slane %v1434_v44, 1 }
  0xe6   : > { %v1209_v27 = vld [vmem:[#allocation1] sm:$0xff]  ;;  %v1535_v23 = vshrl.u32 %v1436_v54, 16 }
  0xe7   : > { %1213 = vst [vmem:[#allocation1] ss:$4 sm:$0xff] %v1178_v49  ;;  %v2208_v49 = vld [vmem:[%s2464_s16 + $0x18] sm:$0xf] }
  0xe8   : > { %1214 = vst [vmem:[#allocation1 + $0x1] ss:$4 sm:$0xff] %v1181_v32  ;;  %1229 = vrot.lane.b32.xlu0 %v1209_v27, %s2421_s17  ;;  %v1306_v32 = vsel %vm183_vm0, %v2202_v57, %v1266_v19  ;;  %v1511_v27 = vshrl.u32 %v1424_v43, 16  ;;  %v1405_v57 = vrot.slane %v2208_v49, 3  ;;  %v1527_v19 = vshrl.u32 %v1433_v12, 16 }
  0xe9   : > { %1215 = vst [vmem:[#allocation1 + $0x2] ss:$4 sm:$0xff] %v1182_v36  ;;  %v1309_v36 = vrot.slane %v1307_v16, 1  ;;  %v1532_v16 = vshll.u32 %v1436_v54, 16 }
  0xea   : > { %v1223_v0 = vld [vmem:[#allocation1 + $0x20] sm:$0xff]  ;;  %1216 = vst [vmem:[#allocation1 + $0x3] ss:$4 sm:$0xff] %v1183_v37  ;;  %v1425_v37 = vsel %vm191_vm2, %v2849_v4, %v2855_v11  ;;  %v1464_v44 = vsel %vm321_vm11, %v2208_v49, %v1405_v57 }
  0xeb   : > { %1235 = vrot.lane.b32.xlu1 %v1223_v0, %s2421_s17  ;;  %1333 = vst [vmem:[#allocation1 + $0x20] ss:$4 sm:$0xff] %v1282_v40  ;;  %v1427_v18 = vrot.slane %v1425_v37, 2  ;;  %v1270_v40 = vsel %vm183_vm0, %v2198_v15, %v1262_v30  ;;  %v2201_v0 = vld [vmem:[%s2464_s16 + $0x14] sm:$0x7]  ;;  %v1458_v30 = vsel %vm187_vm1, %v2208_v49, %v1405_v57  ;;  %v1461_v37 = vsel %vm191_vm2, %v2208_v49, %v1405_v57 }
  0xec   : > { %1336 = vst [vmem:[#allocation1 + $0x21] ss:$4 sm:$0xff] %v1285_v47  ;;  %v1265_v15 = vrot.slane %v2201_v0, 3  ;;  %v1463_v52 = vrot.slane %v1461_v37, 2  ;;  %v1466_v12 = vrot.slane %v1464_v44, 3 }
  0xed   : > { %1338 = vst [vmem:[#allocation1 + $0x22] ss:$4 sm:$0xff] %v1288_v1  ;;  %v1516_v56 = vshll.u32 %v1427_v18, 16  ;;  %v1519_v1 = vshrl.u32 %v1427_v18, 16  ;;  %v1460_v18 = vrot.slane %v1458_v30, 1 }
  0xee   : > { %1341 = vst [vmem:[#allocation1 + $0x23] ss:$4 sm:$0xff] %v1291_v2  ;;  %v1301_v54 = vsel %vm191_vm2, %v2201_v0, %v1265_v15 }
  0xf1   : > { %v1221_v21 = vld [vmem:[#allocation1] sm:$0xff] }
  0xf2   : > { %1225 = vst [vmem:[#allocation1] ss:$4 sm:$0xff] %v1192_v46  ;;  %1233 = vrot.lane.b32.xlu0 %v1221_v21, %s2421_s17  ;;  %v1315_v46 = vsel %vm183_vm0, %v2858_v13, %v2868_v10  ;;  %v2912_v21 = vrot.slane %v2902_v62, 3 }
  0xf3   : > { %1226 = vst [vmem:[#allocation1 + $0x1] ss:$4 sm:$0xff] %v1193_v48  ;;  %v1430_v48 = vrot.slane %v1428_v9, 3  ;;  %v1292_v9 = vsel %vm191_vm2, %v2829_v59, %v2833_v61  ;;  %v1298_v59 = vsel %vm187_vm1, %v2201_v0, %v1265_v15  ;;  %v1457_v61 = vsel %vm183_vm0, %v2208_v49, %v1405_v57 }
  0xf4   : > { %v2932_v24 = vsel %vm187_vm1, %v2902_v62, %v2912_v21  ;;  %v1580_v49 = vshll.u32 %v1460_v18, 16 }
  0xf5   : > { %v1344_v26 = vld [vmem:[#allocation1 + $0x20] sm:$0xff]  ;;  %v1524_v2 = vshll.u32 %v1430_v48, 16 }
  0xf6   : > { %1371 = vrot.lane.b32.xlu1 %v1344_v26, %s2422_s18  ;;  %1353 = vst [vmem:[#allocation1 + $0x20] ss:$4 sm:$0xff] %v1306_v32  ;;  %v1540_v32 = vshll.u32 %v1439_v34, 16 }
  0xf7   : > { %1355 = vst [vmem:[#allocation1 + $0x21] ss:$4 sm:$0xff] %v1309_v36  ;;  %v1518_v36 = vsel %vm2545_vm5, %v1511_v27, %v1516_v56  ;;  %v1472_v27 = vrot.slane %v2932_v24, 1  ;;  %v1575_v56 = vshrl.u32 %v1457_v61, 16 }
  0xf8   : > { %1357 = vst [vmem:[#allocation1 + $0x22] ss:$4 sm:$0xff] %v1312_v39  ;;  %v1526_v39 = vsel %vm2545_vm5, %v1519_v1, %v1524_v2  ;;  %v1542_v48 = vsel %vm2545_vm5, %v1535_v23, %v1540_v32  ;;  %v1583_v1 = vshrl.u32 %v1460_v18, 16  ;;  %v1588_v2 = vshll.u32 %v1463_v52, 16 }
  0xf9   : > { %1358 = vst [vmem:[#allocation1 + $0x23] ss:$4 sm:$0xff] %v1315_v46  ;;  %v1534_v46 = vsel %vm2545_vm5, %v1527_v19, %v1532_v16  ;;  %v2204_v19 = vld [vmem:[%s2464_s16 + $0x8] sm:$0xf]  ;;  %v1591_v16 = vshrl.u32 %v1463_v52, 16  ;;  %v1596_v23 = vshll.u32 %v1466_v12, 16 }
  0xfa   : > { %v1227_v47 = vld [vmem:[#allocation1] sm:$0xff]  ;;  %v1401_v30 = vrot.slane %v2204_v19, 3  ;;  %v1590_v37 = vsel %vm2545_vm5, %v1583_v1, %v1588_v2 }
  0xfb   : > { %1330 = vst [vmem:[#allocation1 + $0x3] ss:$4 sm:$0xff] %v1279_v53  ;;  %v1294_v53 = vrot.slane %v1292_v9, 2 }
  0xfc   : > { %1322 = vst [vmem:[#allocation1] ss:$4 sm:$0xff] %v1270_v40  ;;  %v1297_v40 = vsel %vm183_vm0, %v2201_v0, %v1265_v15  ;;  %v1604_v0 = vshll.u32 %v1472_v27, 16  ;;  %v1582_v15 = vsel %vm2545_vm5, %v1575_v56, %v1580_v49  ;;  %v1410_v18 = vsel %vm187_vm1, %v2204_v19, %v1401_v30 }
  0xfd   : > { %1325 = vst [vmem:[#allocation1 + $0x1] ss:$4 sm:$0xff] %v1273_v51  ;;  %v1300_v51 = vrot.slane %v1298_v59, 1  ;;  %v1413_v59 = vsel %vm191_vm2, %v2204_v19, %v1401_v30  ;;  %v1412_v52 = vrot.slane %v1410_v18, 1 }
  0xfe   : > { %1237 = vrot.lane.b32.xlu1 %v1227_v47, %s2421_s17  ;;  %1328 = vst [vmem:[#allocation1 + $0x2] ss:$4 sm:$0xff] %v1276_v60  ;;  %v1469_v47 = vsel %vm183_vm0, %v2902_v62, %v2912_v21  ;;  %v1303_v60 = vrot.slane %v1301_v54, 2  ;;  %v1415_v54 = vrot.slane %v1413_v59, 2 }
  0xff   : > { %v1599_v32 = vshrl.u32 %v1469_v47, 16  ;;  %v2229_v47 = vld [vmem:[%s2464_s16 + $0xc] sm:$0xe]  ;;  %v1484_v49 = vshll.u32 %v1412_v52, 16 }
 0x100   : > { %v1361_v26 = vld [vmem:[#allocation1 + $0x20] sm:$0xff] }
 0x101   : > { %1636 = vst [vmem:[#allocation1 + $0x20] ss:$4 sm:$0xff] %v1518_v36  ;;  %1375 = vrot.lane.b32.xlu0 %v1361_v26, %s2422_s18  ;;  %v1319_v36 = vsel %vm191_vm2, %v2858_v13, %v2868_v10  ;;  %v1316_v26 = vsel %vm187_vm1, %v2858_v13, %v2868_v10  ;;  %v1606_v44 = vsel %vm2545_vm5, %v1599_v32, %v1604_v0 }
 0x102   : > { %1639 = vst [vmem:[#allocation1 + $0x21] ss:$4 sm:$0xff] %v1526_v39  ;;  %v1598_v39 = vsel %vm2545_vm5, %v1591_v16, %v1596_v23  ;;  %v1416_v13 = vsel %vm321_vm11, %v2204_v19, %v1401_v30  ;;  %v1421_v10 = vsel %vm183_vm0, %v2849_v4, %v2855_v11  ;;  %v1492_v4 = vshll.u32 %v1415_v54, 16 }
 0x103   : > { %1642 = vst [vmem:[#allocation1 + $0x22] ss:$4 sm:$0xff] %v1534_v46  ;;  %v1321_v46 = vrot.slane %v1319_v36, 2  ;;  %v1418_v12 = vrot.slane %v1416_v13, 3 }
 0x104   : > { %1645 = vst [vmem:[#allocation1 + $0x23] ss:$4 sm:$0xff] %v1542_v48  ;;  %v1318_v48 = vrot.slane %v1316_v26, 1 }
 0x105   : > { %v1342_v57 = vld [vmem:[#allocation1] sm:$0xff]  ;;  %v1500_v1 = vshll.u32 %v1418_v12, 16 }
 0x106   : > { %1369 = vrot.lane.b32.xlu1 %v1342_v57, %s2422_s18  ;;  %1347 = vst [vmem:[#allocation1] ss:$4 sm:$0xff] %v1294_v53  ;;  %v1409_v53 = vsel %vm183_vm0, %v2204_v19, %v1401_v30  ;;  %v1487_v57 = vshrl.u32 %v1412_v52, 16  ;;  %v1440_v19 = vsel %vm321_vm11, %v2852_v41, %v2864_v7  ;;  %v2231_v7 = vld [vmem:[%s2464_s16 + $0x14] sm:$0xe] }
 0x107   : > { %1348 = vst [vmem:[#allocation1 + $0x1] ss:$4 sm:$0xff] %v1297_v40  ;;  %v1503_v40 = vshrl.u32 %v1421_v10, 16  ;;  %v1479_v56 = vshrl.u32 %v1409_v53, 16  ;;  %v1442_v32 = vrot.slane %v1440_v19, 3 }
 0x108   : > { %1350 = vst [vmem:[#allocation1 + $0x2] ss:$4 sm:$0xff] %v1300_v51  ;;  %v2207_v51 = vld [vmem:[%s2464_s16 + $0x14] sm:$0xf]  ;;  %v1494_v23 = vsel %vm2545_vm5, %v1487_v57, %v1492_v4  ;;  %v2233_v52 = vld [vmem:[%s2464_s16 + $0x1c] sm:$0xe] }
 0x109   : > { %1352 = vst [vmem:[#allocation1 + $0x3] ss:$4 sm:$0xff] %v1303_v60  ;;  %v1495_v60 = vshrl.u32 %v1415_v54, 16  ;;  %v1404_v2 = vrot.slane %v2207_v51, 3 }
 0x10b   : > { %v1648_v9 = vld [vmem:[#allocation1 + $0x20] sm:$0xff]  ;;  %v1502_v0 = vsel %vm2545_vm5, %v1495_v60, %v1500_v1  ;;  %v1446_v41 = vsel %vm187_vm1, %v2207_v51, %v1404_v2  ;;  %v1452_v36 = vsel %vm321_vm11, %v2207_v51, %v1404_v2  ;;  %vm612_vm1 = vcmask 519424  }
 0x10c   : > { %1678 = vrot.lane.b32.xlu2 %v1648_v9, %s2423_s19  ;;  %1659 = vst [vmem:[#allocation1 + $0x20] ss:$4 sm:$0xff] %v1582_v15  ;;  %v1449_v15 = vsel %vm191_vm2, %v2207_v51, %v1404_v2  ;;  %v1448_v30 = vrot.slane %v1446_v41, 1  ;;  %v2343_v41 = vld [vmem:[%s3183_s1 + $0x8] sm:$0xff] }
 0x10d   : > { %1661 = vst [vmem:[#allocation1 + $0x21] ss:$4 sm:$0xff] %v1590_v37  ;;  %v1543_v37 = vshrl.u32 %v1439_v34, 16  ;;  %v1451_v18 = vrot.slane %v1449_v15, 2  ;;  %v845_v15 = vpop.permute.xlu2 %844 }
 0x10e   : > { %1663 = vst [vmem:[#allocation1 + $0x22] ss:$4 sm:$0xff] %v1598_v39  ;;  %846 = vrot.lane.b32.xlu1 %v2772_v31, %s2423_s19  ;;  %v1508_v31 = vshll.u32 %v1424_v43, 16  ;;  %v1486_v43 = vsel %vm2545_vm5, %v1479_v56, %v1484_v49  ;;  %v1548_v39 = vshll.u32 %v1442_v32, 16  ;;  %v1556_v45 = vshll.u32 %v1448_v30, 16 }
 0x10f   : > { %1665 = vst [vmem:[#allocation1 + $0x23] ss:$4 sm:$0xff] %v1606_v44  ;;  %v1559_v34 = vshrl.u32 %v1448_v30, 16  ;;  %v1564_v10 = vshll.u32 %v1451_v18, 16  ;;  %v1567_v54 = vshrl.u32 %v1451_v18, 16  ;;  %v1476_v56 = vsel %vm321_vm11, %v2902_v62, %v2912_v21  ;;  %v2342_v30 = vld [vmem:[%s3183_s1] sm:$0xff] }
 0x110   : > { %v1359_v61 = vld [vmem:[#allocation1] sm:$0xff]  ;;  %v1510_v20 = vsel %vm2545_vm5, %v1503_v40, %v1508_v31  ;;  %v1550_v59 = vsel %vm2545_vm5, %v1543_v37, %v1548_v39  ;;  %v2348_v40 = vld [vmem:[%s3183_s1 + $0x30] sm:$0xff]  ;;  %v1478_v60 = vrot.slane %v1476_v56, 3  ;;  %vm858_vm11 = vcmask 1042176  }
 0x111   : > { %1366 = vst [vmem:[#allocation1 + $0x1] ss:$4 sm:$0xff] %v1321_v46  ;;  %v1445_v46 = vsel %vm183_vm0, %v2207_v51, %v1404_v2  ;;  %v1566_v57 = vsel %vm2545_vm5, %v1559_v34, %v1564_v10  ;;  %vm287_vm0 = vcmask 257024   ;;  %v602_v2 = vpop.permute.xlu0 %601  ;;  %v2353_v10 = vld [vmem:[%s3183_s1 + $0x58] sm:$0xff] }
 0x112   : > { %1364 = vst [vmem:[#allocation1] ss:$4 sm:$0xff] %v1318_v48  ;;  %v1454_v48 = vrot.slane %v1452_v36, 3  ;;  %v1551_v13 = vshrl.u32 %v1445_v46, 16  ;;  %v2356_v36 = vld [vmem:[%s3183_s1 + $0x70] sm:$0xff]  ;;  %v2355_v46 = vld [vmem:[%s3183_s1 + $0x68] sm:$0xff] }
 0x113   : > { %290 = vst.msk [vmem:[#allocation2 + $0x18] sm:$0xf] %vm287_vm0, %v2523_v42 }
 0x114   : > { %1373 = vrot.lane.b32.xlu2 %v1359_v61, %s2422_s18  ;;  %v2349_v61 = vld [vmem:[%s3183_s1 + $0x38] sm:$0xff]  ;;  %v1572_v12 = vshll.u32 %v1454_v48, 16  ;;  %v1558_v49 = vsel %vm2545_vm5, %v1551_v13, %v1556_v45  ;;  %615 = vst.msk [vmem:[#allocation2 + $0x18] sm:$0xf] %vm612_vm1, %v602_v2  ;;  %v2354_v13 = vld [vmem:[%s3183_s1 + $0x60] sm:$0xff] }
 0x115   : > { %2360 = vmatpush.bf16.msra.mxu3 %v2349_v61  ;;  %1985 = vmatpush.bf16.msra.mxu0 %v2349_v61  ;;  %288 = vst.msk [vmem:[#allocation2] sm:$0xf] %vm287_vm0, %v2488_v22  ;;  %v604_v22 = vpop.permute.xlu1 %603  ;;  %v2352_v61 = vld [vmem:[%s3183_s1 + $0x50] sm:$0xff] }
 0x116   : > { %v1668_v11 = vld [vmem:[#allocation1 + $0x20] sm:$0xff]  ;;  %289 = vst.msk [vmem:[#allocation2 + $0xc] sm:$0xf] %vm287_vm0, %v2589_v33  ;;  %v2228_v33 = vld [vmem:[%s2464_s16 + $0x8] sm:$0xe] }
 0x117   : > { %1711 = vst [vmem:[#allocation1 + $0x20] sm:$0xff] %v2229_v47 }
 0x118   : > { %291 = vst.msk [vmem:[#allocation2 + $0x24] sm:$0xf] %vm287_vm0, %v2628_v6 }
 0x119   : > { %v1367_v16 = vld [vmem:[#allocation1] sm:$0xff]  ;;  %2361 = vmatpush.bf16.msra.mxu3 %v2348_v40  ;;  %1986 = vmatpush.bf16.msra.mxu0 %v2348_v40  ;;  %1147 = vst.msk [vmem:[#allocation2 + $0x4] sm:$0xf] %vm287_vm0, %v2804_v63  ;;  %v606_v6 = vpop.permute.xlu0 %605  ;;  %v2359_v40 = vld [vmem:[%s3183_s1 + $0x88] sm:$0xff] }
 0x11a   : > { %1377 = vrot.lane.b32.xlu0 %v1367_v16, %s2422_s18  ;;  %1633 = vst [vmem:[#allocation1 + $0x3] ss:$4 sm:$0xff] %v1510_v20  ;;  %v1620_v20 = vshll.u32 %v1478_v60, 16  ;;  %2037 = vmatpush.bf16.msra.mxu2 %v2359_v40 }
 0x11b   : > { %1624 = vst [vmem:[#allocation1] ss:$4 sm:$0xff] %v1486_v43 }
 0x11c   : > { %1682 = vrot.lane.b32.xlu2 %v1668_v11, %s2423_s19  ;;  %1627 = vst [vmem:[#allocation1 + $0x1] ss:$4 sm:$0xff] %v1494_v23  ;;  %v1574_v11 = vsel %vm2545_vm5, %v1567_v54, %v1572_v12  ;;  %v2351_v54 = vld [vmem:[%s3183_s1 + $0x48] sm:$0xff] }
 0x11d   : > { %1630 = vst [vmem:[#allocation1 + $0x2] ss:$4 sm:$0xff] %v1502_v0  ;;  %v843_v0 = vpop.permute.xlu1 %842 }
 0x11e   : > { %v2997_v9 = vld [vmem:[#allocation1 + $0x21] ss:$4 sm:$0xff]  ;;  %v1715_v26 = vld [vmem:[#allocation1 + $0x22] ss:$4 sm:$0xff]  ;;  %v1717_v44 = vld [vmem:[#allocation1 + $0x23] ss:$4 sm:$0xff] }
 0x11f   : > { %1724 = vst [vmem:[#allocation1 + $0x20] sm:$0xff] %v2231_v7  ;;  %v2357_v7 = vld [vmem:[%s3183_s1 + $0x78] sm:$0xff] }
 0x120   : > { %1148 = vst.msk [vmem:[#allocation2 + $0x10] sm:$0xf] %vm287_vm0, %v2788_v29  ;;  %v2230_v29 = vld [vmem:[%s2464_s16 + $0x10] sm:$0xe]  ;;  %2008 = vmatpush.bf16.msra.mxu1 %v2357_v7 }
 0x121   : > { %1149 = vst.msk [vmem:[#allocation2 + $0x1c] sm:$0xf] %vm287_vm0, %v2815_v17  ;;  %v2345_v17 = vld [vmem:[%s3183_s1 + $0x18] sm:$0xff]  ;;  %v703_v32 = vpop.permute.xlu0 %702 }
 0x122   : > { %597 = vrot.lane.b32.xlu0 %v2618_v50, %s2421_s17  ;;  %v1473_v50 = vsel %vm191_vm2, %v2902_v62, %v2912_v21  ;;  %v2347_v62 = vld [vmem:[%s3183_s1 + $0x28] sm:$0xff]  ;;  %v1607_v21 = vshrl.u32 %v1472_v27, 16  ;;  %vm711_vm2 = vcmask 781824   ;;  %1150 = vst.msk [vmem:[#allocation2 + $0x28] sm:$0xf] %vm287_vm0, %v2809_v14 }
 0x123   : > { %v1475_v4 = vrot.slane %v1473_v50, 2  ;;  %2362 = vmatpush.bf16.msra.mxu3 %v2347_v62  ;;  %1987 = vmatpush.bf16.msra.mxu0 %v2347_v62  ;;  %616 = vst.msk [vmem:[#allocation2 + $0x24] sm:$0xf] %vm612_vm1, %v604_v22 }
 0x124   : > { %v1646_v53 = vld [vmem:[#allocation1] sm:$0xff]  ;;  %714 = vst.msk [vmem:[#allocation2 + $0x18] sm:$0xf] %vm711_vm2, %v701_v58  ;;  %2009 = vmatpush.bf16.msra.mxu1 %v2356_v36 }
 0x125   : > { %1676 = vrot.lane.b32.xlu2 %v1646_v53, %s2423_s19  ;;  %1651 = vst [vmem:[#allocation1] ss:$4 sm:$0xff] %v1550_v59  ;;  %v1612_v1 = vshll.u32 %v1475_v4, 16  ;;  %v1615_v19 = vshrl.u32 %v1475_v4, 16 }
 0x126   : > { %v3015_v31 = vld [vmem:[#allocation1 + $0x21] ss:$4 sm:$0xff]  ;;  %v3017_v51 = vld [vmem:[#allocation1 + $0x22] ss:$4 sm:$0xff]  ;;  %v3019_v47 = vld [vmem:[#allocation1 + $0x23] ss:$4 sm:$0xff] }
 0x127   : > { %1734 = vst [vmem:[#allocation1 + $0x20] sm:$0xff] %v2233_v52  ;;  %v1614_v24 = vsel %vm2545_vm5, %v1607_v21, %v1612_v1  ;;  %v1622_v42 = vsel %vm2545_vm5, %v1615_v19, %v1620_v20  ;;  %v2424_v20 = vmov 0  }
 0x128   : > { %1746 = vst [vmem:[#allocation1 + $0x20] ss:$4 sm:$0xff] %v1715_v26  ;;  %2010 = vmatpush.bf16.msra.mxu1 %v2355_v46 }
 0x129   : > { %1653 = vst [vmem:[#allocation1 + $0x1] ss:$4 sm:$0xff] %v1558_v49 }
 0x12a   : > { %1655 = vst [vmem:[#allocation1 + $0x2] ss:$4 sm:$0xff] %v1566_v57  ;;  %698 = vrot.lane.b32.xlu0 %v2665_v5, %s2422_s18 }
 0x12b   : > { %1657 = vst [vmem:[#allocation1 + $0x3] ss:$4 sm:$0xff] %v1574_v11 }
 0x12c   : > { %618 = vst.msk [vmem:[#allocation2 + $0x30] sm:$0x3] %vm617_vm7, %v606_v6  ;;  %2011 = vmatpush.bf16.msra.mxu1 %v2354_v13 }
 0x12d   : > { %704 = vrot.lane.b32.xlu2 %v2679_v35, %s2422_s18  ;;  %856 = vst.msk [vmem:[#allocation2 + $0x18] sm:$0xf] %vm853_vm8, %v843_v0 }
 0x12e   : > { %v3042_v5 = vld [vmem:[#allocation1 + $0x21] ss:$4 sm:$0xff]  ;;  %v3088_v27 = vld [vmem:[#allocation1 + $0x22] ss:$4 sm:$0xff]  ;;  %v1737_v23 = vld [vmem:[#allocation1 + $0x23] ss:$4 sm:$0xff] }
 0x12f   : > { %1748 = vst [vmem:[#allocation1 + $0x21] ss:$4 sm:$0xff] %v1717_v44 }
 0x130   : > { %715 = vst.msk [vmem:[#allocation2 + $0x24] sm:$0xf] %vm711_vm2, %v703_v32  ;;  %2012 = vmatpush.bf16.msra.mxu1 %v2353_v10 }
 0x131   : > { %857 = vst.msk [vmem:[#allocation2 + $0x24] sm:$0xf] %vm853_vm8, %v845_v15 }
 0x132   : > { %v1666_v35 = vld [vmem:[#allocation1] sm:$0xff]  ;;  %1778 = vst [vmem:[#allocation2 + $0x30] sm:$0xcc] %v2424_v20 }
 0x133   : > { %1680 = vrot.lane.b32.xlu1 %v1666_v35, %s2423_s19  ;;  %1671 = vst [vmem:[#allocation1] ss:$4 sm:$0xff] %v1614_v24 }
 0x134   : > { %1673 = vst [vmem:[#allocation1 + $0x1] ss:$4 sm:$0xff] %v1622_v42  ;;  %v2248_v18 = vld [vmem:[#allocation2 + $0x18] sm:$0xf]  ;;  %2013 = vmatpush.bf16.msra.mxu1 %v2352_v61 }
 0x135   : > { %696 = vrot.lane.b32.xlu2 %v2662_v3, %s2422_s18  ;;  %1780 = vst.msk [vmem:[#allocation2 + $0x38] sm:$0xc] %vm1779_vm12, %v2424_v20 }
 0x138   : > { %v2340_v48 = vld [vmem:[#allocation2 + $0x20] sm:$0xf0]  ;;  %2014 = vmatpush.bf16.msra.mxu1 %v2351_v54 }
 0x139   : > { %v2249_v59 = vor.u32 %v2340_v48, %v2248_v18 }
 0x13b   : > { %599 = vrot.lane.b32.xlu1 %v2650_v25, %s2421_s17  ;;  %v1674_v3 = vld [vmem:[#allocation1] sm:$0xff] }
 0x13c   : > { %1703 = vst [vmem:[#allocation1] sm:$0xff] %v2228_v33  ;;  %v2346_v25 = vld [vmem:[%s3183_s1 + $0x20] sm:$0xff] }
 0x13d   : > { %1684 = vrot.lane.b32.xlu2 %v1674_v3, %s2423_s19  ;;  %2363 = vmatpush.bf16.msra.mxu3 %v2346_v25 }
 0x13e   : > { %1988 = vmatpush.bf16.msra.mxu0 %v2346_v25 }
 0x141   : > { %2364 = vmatpush.bf16.msra.mxu3 %v2345_v17 }
 0x142   : > { %1989 = vmatpush.bf16.msra.mxu0 %v2345_v17 }
 0x143   : > { %838 = vrot.lane.b32.xlu1 %v2694_v55, %s2423_s19  ;;  %v1705_v63 = vld [vmem:[#allocation1 + $0x1] ss:$4 sm:$0xff]  ;;  %v1707_v14 = vld [vmem:[#allocation1 + $0x2] ss:$4 sm:$0xff]  ;;  %v1709_v8 = vld [vmem:[#allocation1 + $0x3] ss:$4 sm:$0xff] }
 0x144   : > { %1719 = vst [vmem:[#allocation1] sm:$0xff] %v2230_v29 }
 0x145   : > { %840 = vrot.lane.b32.xlu2 %v2699_v38, %s2423_s19  ;;  %v2344_v38 = vld [vmem:[%s3183_s1 + $0x10] sm:$0xff] }
 0x146   : > { %2365 = vmatpush.bf16.msra.mxu3 %v2344_v38  ;;  %1990 = vmatpush.bf16.msra.mxu0 %v2344_v38 }
 0x14a   : > { %2366 = vmatpush.bf16.msra.mxu3 %v2343_v41  ;;  %1991 = vmatpush.bf16.msra.mxu0 %v2343_v41 }
 0x14b   : > { %v1720_v55 = vld [vmem:[#allocation1 + $0x1] ss:$4 sm:$0xff]  ;;  %v1721_v43 = vld [vmem:[#allocation1 + $0x2] ss:$4 sm:$0xff]  ;;  %v1722_v16 = vld [vmem:[#allocation1 + $0x3] ss:$4 sm:$0xff] }
 0x14c   : > { %1729 = vst [vmem:[#allocation1] sm:$0xff] %v2232_v28 }
 0x14d   : > { %1738 = vst [vmem:[#allocation1] ss:$4 sm:$0xff] %v1705_v63 }
 0x14e   : > { %1750 = vst [vmem:[#allocation1 + $0x22] ss:$4 sm:$0xff] %v1720_v55  ;;  %2367 = vmatpush.bf16.msra.mxu3 %v2342_v30  ;;  %1992 = vmatpush.bf16.msra.mxu0 %v2342_v30 }
 0x14f   : > { %1752 = vst [vmem:[#allocation1 + $0x23] ss:$4 sm:$0xff] %v1721_v43 }
 0x151   : > { %1998 = vmatmul.bf16.vlgmr.msra.gmra.mxu3 %v2249_v59 }
 0x152   : > { %v1232_v44 = vpop.permute.xlu0 %1231 }
 0x153   : > { %v1730_v37 = vld [vmem:[#allocation1 + $0x1] ss:$4 sm:$0xff]  ;;  %v1731_v39 = vld [vmem:[#allocation1 + $0x2] ss:$4 sm:$0xff]  ;;  %v1732_v26 = vld [vmem:[#allocation1 + $0x3] ss:$4 sm:$0xff] }
 0x154   : > { %1740 = vst [vmem:[#allocation1 + $0x1] ss:$4 sm:$0xff] %v1707_v14 }
 0x155   : > { %1742 = vst [vmem:[#allocation1 + $0x2] ss:$4 sm:$0xff] %v1709_v8 }
 0x156   : > { %1744 = vst [vmem:[#allocation1 + $0x3] ss:$4 sm:$0xff] %v2997_v9 }
 0x157   : > { %1245 = vst.msk [vmem:[#allocation2 + $0x10] sm:$0xf] %vm612_vm1, %v1232_v44 }
 0x15a   : > { %v1230_v45 = vpop.permute.xlu0 %1229 }
 0x15b   : > { %1244 = vst.msk [vmem:[#allocation2 + $0x4] sm:$0xf] %vm612_vm1, %v1230_v45 }
 0x15d   : > { %v1753_v9 = vld [vmem:[#allocation1] sm:$0xff]  ;;  %v1236_v34 = vpop.permute.xlu1 %1235 }
 0x15e   : > { %1755 = vst [vmem:[#allocation1] ss:$4 sm:$0xff] %v1722_v16 }
 0x15f   : > { %1756 = vst [vmem:[#allocation1 + $0x1] ss:$4 sm:$0xff] %v3015_v31  ;;  %v2350_v31 = vld [vmem:[%s3183_s1 + $0x40] sm:$0xff] }
 0x160   : > { %1757 = vst [vmem:[#allocation1 + $0x2] ss:$4 sm:$0xff] %v3017_v51  ;;  %v2358_v51 = vld [vmem:[%s3183_s1 + $0x80] sm:$0xff]  ;;  %2015 = vmatpush.bf16.msra.mxu1 %v2350_v31 }
 0x161   : > { %1758 = vst [vmem:[#allocation1 + $0x3] ss:$4 sm:$0xff] %v3019_v47  ;;  %v1754_v47 = vld [vmem:[#allocation1 + $0x20] sm:$0xff]  ;;  %2038 = vmatpush.bf16.msra.mxu2 %v2358_v51 }
 0x162   : > { %1773 = vst.msk [vmem:[#allocation2 + $0x8] sm:$0xf] %vm287_vm0, %v1753_v9 }
 0x163   : > { %1247 = vst.msk [vmem:[#allocation2 + $0x28] sm:$0xf] %vm612_vm1, %v1236_v34 }
 0x164   : > { %v1234_v52 = vpop.permute.xlu0 %1233  ;;  %1759 = vst [vmem:[#allocation1 + $0x20] ss:$4 sm:$0xff] %v1730_v37 }
 0x165   : > { %1246 = vst.msk [vmem:[#allocation2 + $0x1c] sm:$0xf] %vm612_vm1, %v1234_v52 }
 0x166   : > { %v1679_v53 = vpop.permute.xlu2 %1678  ;;  %1774 = vst.msk [vmem:[#allocation2 + $0x14] sm:$0xf] %vm287_vm0, %v1754_v47 }
 0x167   : > { %1760 = vst [vmem:[#allocation1 + $0x21] ss:$4 sm:$0xff] %v1731_v39 }
 0x168   : > { %v1763_v12 = vld [vmem:[#allocation1] sm:$0xff]  ;;  %v1372_v50 = vpop.permute.xlu1 %1371  ;;  %1761 = vst [vmem:[#allocation1 + $0x22] ss:$4 sm:$0xff] %v1732_v26 }
 0x169   : > { %1765 = vst [vmem:[#allocation1] ss:$4 sm:$0xff] %v3088_v27  ;;  %v2244_v11 = vld [vmem:[#allocation2 + $0x8] sm:$0xf] }
 0x16a   : > { %1766 = vst [vmem:[#allocation1 + $0x1] ss:$4 sm:$0xff] %v1737_v23 }
 0x16b   : > { %1775 = vst.msk [vmem:[#allocation2 + $0x20] sm:$0xf] %vm287_vm0, %v1763_v12 }
 0x16c   : > { %1385 = vst.msk [vmem:[#allocation2 + $0x10] sm:$0xf] %vm711_vm2, %v1372_v50 }
 0x16d   : > { %1692 = vst.msk [vmem:[#allocation2 + $0x10] sm:$0xf] %vm853_vm8, %v1679_v53  ;;  %v2338_v62 = vld [vmem:[#allocation2 + $0x10] sm:$0xf0] }
 0x16e   : > { %v1374_v56 = vpop.permute.xlu2 %1373  ;;  %1762 = vst [vmem:[#allocation1 + $0x23] ss:$4 sm:$0xff] %v3042_v5  ;;  %v2245_v1 = vor.u32 %v2338_v62, %v2244_v11 }
 0x16f   : > { %1386 = vst.msk [vmem:[#allocation2 + $0x1c] sm:$0xf] %vm711_vm2, %v1374_v56 }
 0x170   : > { %v1238_v49 = vpop.permute.xlu1 %1237  ;;  %2330 = vmatmul.msk.bf16.vlgmr.msra.gmra.mxu2 %vm1975_vm9, %v2245_v1 }
 0x171   : > { %v1767_v57 = vld [vmem:[#allocation1] sm:$0xff]  ;;  %1248 = vst.msk [vmem:[#allocation2 + $0x34] sm:$0x3] %vm617_vm7, %v1238_v49 }
 0x172   : > { %1777 = vst.msk [vmem:[#allocation2 + $0x38] sm:$0x3] %vm292_vm6, %v1767_v57  ;;  %v2256_v24 = vld [vmem:[#allocation2 + $0x20] sm:$0xf] }
 0x173   : > { %v1376_v4 = vpop.permute.xlu0 %1375 }
 0x174   : > { %1387 = vst.msk [vmem:[#allocation2 + $0x28] sm:$0xf] %vm711_vm2, %v1376_v4  ;;  %v2238_v33 = vld [vmem:[#allocation2 + $0xc] sm:$0xf0] }
 0x175   : > { %v1764_v2 = vld [vmem:[#allocation1 + $0x20] sm:$0xff] }
 0x176   : > { %v1683_v60 = vpop.permute.xlu2 %1682  ;;  %1776 = vst.msk [vmem:[#allocation2 + $0x2c] sm:$0xf] %vm287_vm0, %v1764_v2 }
 0x177   : > { %1694 = vst.msk [vmem:[#allocation2 + $0x28] sm:$0xf] %vm853_vm8, %v1683_v60 }
 0x178   : > { %v1370_v21 = vpop.permute.xlu1 %1369 }
 0x179   : > { %1384 = vst.msk [vmem:[#allocation2 + $0x4] sm:$0xf] %vm711_vm2, %v1370_v21  ;;  %v1790_v63 = vld [vmem:[#allocation2 + $0x38] sm:$0xf] }
 0x17a   : > { %v1851_v14 = vunpack.c.l.b16 %v1790_v63 }
 0x17c   : > { %v1860_v25 = vpack.c.b16 %v1851_v14, %v1851_v14 }
 0x17d   : > { %v2341_v5 = vld [vmem:[#allocation2 + $0x28] sm:$0xf0] }
 0x17e   : > { %v2257_v35 = vor.u32 %v2341_v5, %v2256_v24  ;;  %v2250_v38 = vld [vmem:[#allocation2 + $0x24] sm:$0xf0] }
 0x17f   : > { %v1677_v19 = vpop.permute.xlu2 %1676 }
 0x180   : > { %1691 = vst.msk [vmem:[#allocation2 + $0x4] sm:$0xf] %vm853_vm8, %v1677_v19  ;;  %v847_v42 = vpop.permute.xlu1 %846  ;;  %2331 = vmatmul.msk.bf16.gmra.mxu2 %vm1975_vm9, %v2257_v35 }
 0x187   : > { %v705_v22 = vpop.permute.xlu2 %704  ;;  %v2336_v58 = vld [vmem:[#allocation2 + $0x4] sm:$0xf] }
 0x188   : > { %717 = vst.msk [vmem:[#allocation2 + $0x30] sm:$0x3] %vm716_vm10, %v705_v22  ;;  %v2241_v6 = vor.u32 %v2336_v58, %v2238_v33 }
 0x189   : > { %859 = vst.msk [vmem:[#allocation2 + $0x30] sm:$0x3] %vm858_vm11, %v847_v42 }
 0x18a   : > { %2016 = vmatmul.bf16.vlgmr.msra.gmra.mxu1 %v2241_v6 }
 0x18c   : > { %v1378_v3 = vpop.permute.xlu0 %1377 }
 0x18d   : > { %1388 = vst.msk [vmem:[#allocation2 + $0x34] sm:$0x3] %vm716_vm10, %v1378_v3 }
 0x18f   : > { %v697_v29 = vpop.permute.xlu2 %696 }
 0x190   : > { %2332 = vmatmul.msk.bf16.gmra.mxu2 %vm1975_vm9, %v1860_v25 }
 0x194   : > { %v598_v8 = vpop.permute.xlu0 %597 }
 0x195   : > { %613 = vst.msk [vmem:[#allocation2] sm:$0xf] %vm612_vm1, %v598_v8 }
 0x196   : > { %712 = vst.msk [vmem:[#allocation2] sm:$0xf] %vm711_vm2, %v697_v29 }
 0x197   : > { %v1685_v17 = vpop.permute.xlu2 %1684 }
 0x198   : > { %1695 = vst.msk [vmem:[#allocation2 + $0x34] sm:$0x3] %vm858_vm11, %v1685_v17 }
 0x19c   : > { %v699_v16 = vpop.permute.xlu0 %698 }
 0x19f   : > { %v1789_v28 = vld [vmem:[#allocation2 + $0x30] sm:$0xff]  ;;  %v841_v0 = vpop.permute.xlu2 %840 }
 0x1a0   : > { %v1849_v27 = vunpack.c.l.b16 %v1789_v28  ;;  %v1850_v15 = vunpack.c.h.b16 %v1789_v28 }
 0x1a2   : > { %v1858_v55 = vpack.c.b16 %v1849_v27, %v1849_v27  ;;  %v1859_v39 = vpack.c.b16 %v1850_v15, %v1850_v15 }
 0x1a4   : > { %2003 = vmatmul.bf16.gmra.mxu3 %v1858_v55 }
 0x1a5   : > { %v1681_v43 = vpop.permute.xlu1 %1680 }
 0x1a6   : > { %1693 = vst.msk [vmem:[#allocation2 + $0x1c] sm:$0xf] %vm853_vm8, %v1681_v43 }
 0x1ad   : > { %v600_v23 = vpop.permute.xlu1 %599  ;;  %v2339_v32 = vld [vmem:[#allocation2 + $0x1c] sm:$0xf] }
 0x1ae   : > { %614 = vst.msk [vmem:[#allocation2 + $0xc] sm:$0xf] %vm612_vm1, %v600_v23  ;;  %v2253_v41 = vor.u32 %v2339_v32, %v2250_v38 }
 0x1af   : > { %713 = vst.msk [vmem:[#allocation2 + $0xc] sm:$0xf] %vm711_vm2, %v699_v16 }
 0x1b0   : > { %2021 = vmatmul.bf16.gmra.mxu1 %v2253_v41  ;;  %855 = vst.msk [vmem:[#allocation2 + $0xc] sm:$0xf] %vm853_vm8, %v841_v0 }
 0x1b5   : > { %v839_v7 = vpop.permute.xlu1 %838 }
 0x1b6   : > { %854 = vst.msk [vmem:[#allocation2] sm:$0xf] %vm853_vm8, %v839_v7 }
 0x1b7   : > { %v2337_v30 = vld [vmem:[#allocation2 + $0x8] sm:$0xf0] }
 0x1bd   : > { %v2236_v36 = vld [vmem:[#allocation2] sm:$0xf] }
 0x1be   : > { %v2237_v37 = vor.u32 %v2337_v30, %v2236_v36 }
 0x1c0   : > { %1993 = vmatmul.bf16.vlgmr.msra.gmra.mxu0 %v2237_v37  ;;  %2026 = vmatmul.bf16.gmra.mxu1 %v1859_v39 }
 0x1d4   : > { %v1999_v18 = vpop.f32.mrf.mxu3 }
 0x1dc   : > { %v2001_v45 = vpop.f32.mrf.mxu3 }
 0x1f3   : > { %v2040_v26 = vpop.f32.mrf.mxu2 }
 0x1fb   : > { %v2042_v44 = vpop.f32.mrf.mxu2 }
 0x203   : > { %v2045_v46 = vpop.f32.mrf.mxu2 }
 0x207   : > { %v2017_v59 = vpop.f32.mrf.mxu1 }
 0x20b   : > { %v2047_v48 = vpop.f32.mrf.mxu2 }
 0x20f   : > { %v2019_v9 = vpop.f32.mrf.mxu1 }
 0x213   : > { %v2050_v13 = vpop.f32.mrf.mxu2 }
 0x21b   : > { %v2052_v34 = vpop.f32.mrf.mxu2 }
 0x227   : > { %v2004_v10 = vpop.f32.mrf.mxu3 }
 0x22d   : > { %v2022_v61 = vpop.f32.mrf.mxu1 }
 0x22e   : > { %v2023_v52 = vadd.f32 %v2022_v61, %v1999_v18 }
 0x22f   : > { %v2006_v53 = vpop.f32.mrf.mxu3 }
 0x230   : > { %v2046_v54 = vadd.f32 %v2045_v46, %v2023_v52 }
 0x232   : > { %2056 = vst [vmem:[%s163_s7 + $0x10] sm:$0xff] %v2046_v54 }
 0x235   : > { %v2024_v12 = vpop.f32.mrf.mxu1 }
 0x236   : > { %v2025_v50 = vadd.f32 %v2024_v12, %v2001_v45 }
 0x238   : > { %v2048_v40 = vadd.f32 %v2047_v48, %v2025_v50 }
 0x23a   : > { %2057 = vst [vmem:[%s163_s7 + $0x18] sm:$0xff] %v2048_v40 }
 0x23d   : > { %v1994_v31 = vpop.f32.mrf.mxu0  ;;  %v2027_v51 = vpop.f32.mrf.mxu1 }
 0x23e   : > { %v2018_v47 = vadd.f32 %v2017_v59, %v1994_v31  ;;  %v2028_v56 = vadd.f32 %v2027_v51, %v2004_v10 }
 0x240   : > { %v2041_v49 = vadd.f32 %v2040_v26, %v2018_v47  ;;  %v2051_v57 = vadd.f32 %v2050_v13, %v2028_v56 }
 0x242   : > { %2054 = vst [vmem:[%s163_s7] sm:$0xff] %v2041_v49 }
 0x243   : > { %2058 = vst [vmem:[%s163_s7 + $0x20] sm:$0xff] %v2051_v57 }
 0x245   : > { %v1996_v4 = vpop.f32.mrf.mxu0  ;;  %v2029_v11 = vpop.f32.mrf.mxu1 }
 0x246   : > { %v2020_v60 = vadd.f32 %v2019_v9, %v1996_v4 }
 0x248   : > { %v2043_v62 = vadd.f32 %v2042_v44, %v2020_v60 }
 0x24a   : > { %2055 = vst [vmem:[%s163_s7 + $0x8] sm:$0xff] %v2043_v62 }
 0x24b PF: > { %s12_s11 = sadd.s32 1, %s2419_s11   ;;  %s3189_s9 = smov %s2415_s10 }
 0x24c   : > { %p9_p5 = scmp.ge.s32.totalorder %s12_s11, 4   ;;  %s3190_s10 = smov %s3192_s12 }
 0x24e   :  { %11 = sbr.rel (!%p9_p5) target bundleno = 2 (0x2), region = 141 }

</bundles_post_ra>
